<compile_context>
chip_gen: v5e
topology: v5e:2x2
jax: 0.10.0
libtpu: 0.0.40
codegen_flags: <defaults>
</compile_context>

<pallas_src>
import functools
import math

import jax
import jax.numpy as jnp
from jax.experimental import pallas as pl
from jax.experimental.pallas import tpu as pltpu

# ---------------------------------------------------------------------------
# "cfg" constants (synthetic, mirroring cfg.MODEL.MESH_HEAD.*)
# ---------------------------------------------------------------------------
ICO_SPHERE_LEVEL = 0          # ico_sphere(0) == icosahedron: 12 verts, 20 faces
NUM_STAGES = 2                # cfg.MODEL.MESH_HEAD.NUM_STAGES
HIDDEN = 32                   # cfg.MODEL.MESH_HEAD.GRAPH_CONV_DIM
STAGE_DEPTH = 2               # cfg.MODEL.MESH_HEAD.NUM_GRAPH_CONVS
BACKBONE_FEAT_DIMS = (8, 16)  # build_backbone(...) -> feat_dims; sum == 24
OUT_PAD = 128                 # lane-dense packed width of the stage output
VMEM_LIMIT = 32 * 1024 * 1024 # explicit scoped-VMEM limit (safe on v5e/v6e/v7x)

# get_blender_intrinsic_matrix()
BLENDER_K = jnp.array(
    [[2.1875, 0.0, 0.0, 0.0],
     [0.0, 2.1875, 0.0, 0.0],
     [0.0, 0.0, -1.002002, -0.2002002],
     [0.0, 0.0, -1.0, 0.0]], dtype=jnp.float32)

ICO_FACES_LIST = [
    (0, 11, 5), (0, 5, 1), (0, 1, 7), (0, 7, 10), (0, 10, 11),
    (1, 5, 9), (5, 11, 4), (11, 10, 2), (10, 7, 6), (7, 1, 8),
    (3, 9, 4), (3, 4, 2), (3, 2, 6), (3, 6, 8), (3, 8, 9),
    (4, 9, 5), (2, 4, 11), (6, 2, 10), (8, 6, 7), (9, 8, 1),
]


# ---------------------------------------------------------------------------
# Pallas kernel 1: tiled matmul + bias + ReLU (backbone im2col conv)
# ---------------------------------------------------------------------------
def _matmul_bias_relu_kernel(x_ref, w_ref, b_ref, o_ref):
    y = jnp.dot(x_ref[...], w_ref[...], preferred_element_type=jnp.float32)
    o_ref[...] = jnp.maximum(y + b_ref[...], 0.0)


def _pick_tm(M):
    """Row-tile size: >=2 row tiles when possible, multiple of 8, capped at 512."""
    if M >= 1024:
        return 512
    tm = max(8, ((M // 2) + 7) // 8 * 8)
    return min(tm, M)


def pallas_matmul_bias_relu(x, w, b):
    """relu(x @ w + b), tiled over rows, bf16 operands / f32 accumulate."""
    M, K = x.shape
    Nc = w.shape[1]
    tm = _pick_tm(M)
    Mp = ((M + tm - 1) // tm) * tm
    if Mp != M:
        x = jnp.pad(x, ((0, Mp - M), (0, 0)))
    xb = x.astype(jnp.bfloat16)
    wb = w.astype(jnp.bfloat16)
    out = pl.pallas_call(
        _matmul_bias_relu_kernel,
        out_shape=jax.ShapeDtypeStruct((Mp, Nc), jnp.float32),
        grid=(Mp // tm,),
        in_specs=[pl.BlockSpec((tm, K), lambda i: (i, 0)),
                  pl.BlockSpec((K, Nc), lambda i: (0, 0)),
                  pl.BlockSpec((1, Nc), lambda i: (0, 0))],
        out_specs=pl.BlockSpec((tm, Nc), lambda i: (i, 0)),
        compiler_params=pltpu.CompilerParams(
            dimension_semantics=("parallel",),
            vmem_limit_bytes=VMEM_LIMIT),
    )(xb, wb, b.reshape(1, Nc).astype(jnp.float32))
    return out[:M] if Mp != M else out


# ---------------------------------------------------------------------------
# Pallas kernel 2: fused mesh-refinement stage
#   bottleneck(+ReLU) -> STAGE_DEPTH GraphConvs(+ReLU) -> tanh offset head
#   -> in-kernel verts += offsets; all intermediates kept in VMEM,
#   one program per mesh in the batch ("parallel" grid).
# ---------------------------------------------------------------------------
def _pos_matmul(pos, w3):
    # (V, 3) @ (3, C) done as 3 broadcast multiply-adds (VPU); K=3 is below MXU
    # granularity, so this avoids a degenerate MXU push.
    return (pos[:, 0:1] * w3[0:1, :]
            + pos[:, 1:2] * w3[1:2, :]
            + pos[:, 2:3] * w3[2:3, :])


def _stage_kernel(*refs, depth, has_prev, hidden, out_pad):
    idx = 0
    samp_ref = refs[idx]; idx += 1
    pos_ref = refs[idx]; idx += 1
    verts_ref = refs[idx]; idx += 1
    prev_ref = None
    if has_prev:
        prev_ref = refs[idx]; idx += 1
    adj_ref = refs[idx]; idx += 1
    wb_ref, bb_ref = refs[idx], refs[idx + 1]; idx += 2
    gconvs = []
    for g in range(depth):
        wh, wp = refs[idx], refs[idx + 1]; idx += 2
        wv = None
        if g == 0 and has_prev:
            wv = refs[idx]; idx += 1
        bc = refs[idx]; idx += 1
        gconvs.append((wh, wp, wv, bc))
    woh_ref, wop_ref, bo_ref = refs[idx], refs[idx + 1], refs[idx + 2]; idx += 3
    out_ref = refs[idx]

    samp = samp_ref[0]            # (V, F)
    pos = pos_ref[0]              # (V, 3)   projected verts (pos features)
    verts = verts_ref[0]          # (V, 3)   current 3D mesh verts
    adj = adj_ref[...]            # (V, V)

    # bottleneck + ReLU
    h = jnp.dot(samp, wb_ref[...], preferred_element_type=jnp.float32) + bb_ref[...]
    nopos = jnp.maximum(h, 0.0)

    # GraphConvs.  Weights are pre-fused [W0 | W1] -> one (K, 2H) dot; the
    # feature concat [h/nopos | pos | prev] is realized by row-split weights.
    # NOTE: relu(x@W0+b0 + A@(x@W1+b1)) matches pytorch3d GraphConv semantics
    # (b1 accumulated per neighbor, i.e. scaled by vertex degree) — intentional.
    for (wh, wp, wv, bc) in gconvs:
        hc = (jnp.dot(nopos, wh[...], preferred_element_type=jnp.float32)
              + _pos_matmul(pos, wp[...])
              + bc[...])
        if wv is not None:
            hc = hc + jnp.dot(prev_ref[0], wv[...],
                              preferred_element_type=jnp.float32)
        h0 = hc[:, :hidden]
        h1 = hc[:, hidden:]
        nopos = jnp.maximum(
            h0 + jnp.dot(adj, h1, preferred_element_type=jnp.float32), 0.0)

    # vertex offsets: tanh(Linear([nopos, pos])), then meshes.offset_verts
    off = jnp.tanh(jnp.dot(nopos, woh_ref[...], preferred_element_type=jnp.float32)
                   + _pos_matmul(pos, wop_ref[...])
                   + bo_ref[...])                                   # (V, 3)
    new_verts = verts + off                                         # (V, 3)

    # lane-dense packed output: [new_verts(3) | vert_feats(H) | zeros] -> one
    # unmasked full-width store instead of narrow masked stores.
    pad_cols = out_pad - new_verts.shape[1] - nopos.shape[1]
    packed = jnp.concatenate(
        [new_verts, nopos,
         jnp.zeros((new_verts.shape[0], pad_cols), jnp.float32)], axis=1)
    out_ref[0] = packed


def pallas_mesh_stage(stage_params, samp, pos3d, verts, prev_feats, adj):
    """One fused mesh-refinement stage.

    Returns (new_verts (N,V,3), vert_feats (N,V,H)) — the verts offset add is
    fused into the kernel.
    """
    N, V, F = samp.shape
    H = HIDDEN

    wb = stage_params["bottleneck_w"]
    bb = stage_params["bottleneck_b"].reshape(1, H)

    gconv_args = []
    for g, gc in enumerate(stage_params["gconvs"]):
        wcat = jnp.concatenate([gc["w0"], gc["w1"]], axis=1)       # (K, 2H)
        bcat = jnp.concatenate([gc["b0"], gc["b1"]]).reshape(1, 2 * H)
        wh = wcat[:H]                   # rows for h / nopos features
        wp = wcat[H:H + 3]              # rows for vert positions
        wv = None
        if g == 0 and prev_feats is not None:
            wv = wcat[H + 3:H + 3 + H]  # rows for previous-stage vert feats
        gconv_args.append((wh, wp, wv, bcat))

    woh = stage_params["offset_w"][:H]
    wop = stage_params["offset_w"][H:H + 3]
    bo = stage_params["offset_b"].reshape(1, 3)

    args = [samp, pos3d, verts]
    in_specs = [pl.BlockSpec((1, V, F), lambda b: (b, 0, 0)),
                pl.BlockSpec((1, V, 3), lambda b: (b, 0, 0)),
                pl.BlockSpec((1, V, 3), lambda b: (b, 0, 0))]
    if prev_feats is not None:
        args.append(prev_feats)
        in_specs.append(pl.BlockSpec((1, V, H), lambda b: (b, 0, 0)))
    args.append(adj)
    in_specs.append(pl.BlockSpec((V, V), lambda b: (0, 0)))
    args += [wb, bb]
    in_specs += [pl.BlockSpec(wb.shape, lambda b: (0, 0)),
                 pl.BlockSpec(bb.shape, lambda b: (0, 0))]
    for (wh, wp, wv, bcat) in gconv_args:
        args += [wh, wp]
        in_specs += [pl.BlockSpec(wh.shape, lambda b: (0, 0)),
                     pl.BlockSpec(wp.shape, lambda b: (0, 0))]
        if wv is not None:
            args.append(wv)
            in_specs.append(pl.BlockSpec(wv.shape, lambda b: (0, 0)))
        args.append(bcat)
        in_specs.append(pl.BlockSpec(bcat.shape, lambda b: (0, 0)))
    args += [woh, wop, bo]
    in_specs += [pl.BlockSpec(woh.shape, lambda b: (0, 0)),
                 pl.BlockSpec(wop.shape, lambda b: (0, 0)),
                 pl.BlockSpec(bo.shape, lambda b: (0, 0))]

    kernel = functools.partial(
        _stage_kernel, depth=len(gconv_args),
        has_prev=prev_feats is not None, hidden=H, out_pad=OUT_PAD)

    out = pl.pallas_call(
        kernel,
        out_shape=jax.ShapeDtypeStruct((N, V, OUT_PAD), jnp.float32),
        grid=(N,),
        in_specs=in_specs,
        out_specs=pl.BlockSpec((1, V, OUT_PAD), lambda b: (b, 0, 0)),
        compiler_params=pltpu.CompilerParams(
            dimension_semantics=("parallel",),
            vmem_limit_bytes=VMEM_LIMIT),
    )(*args)

    new_verts = out[:, :, :3]
    new_vert_feats = out[:, :, 3:3 + H]
    return new_verts, new_vert_feats


# ---------------------------------------------------------------------------
# Backbone: two 3x3 / stride-2 convs, im2col (JAX glue) + tiled Pallas matmul
# ---------------------------------------------------------------------------
def conv3x3_s2_relu(x_nhwc, w, b):
    # TODO(synk): at realistic resolutions, replace the HBM im2col with an
    # in-kernel shifted-matmul conv to avoid the 9x activation traffic.
    N, H, W, Cin = x_nhwc.shape
    Cout = w.shape[-1]
    Ho, Wo = (H + 1) // 2, (W + 1) // 2
    xp = jnp.pad(x_nhwc, ((0, 0), (1, 1), (1, 1), (0, 0)))
    patches = []
    for kh in range(3):
        for kw in range(3):
            patches.append(xp[:, kh:kh + 2 * Ho - 1:2, kw:kw + 2 * Wo - 1:2, :])
    patch_mat = jnp.concatenate(patches, axis=-1).reshape(N * Ho * Wo, 9 * Cin)
    w_mat = w.reshape(9 * Cin, Cout)  # (kh, kw, cin) ordering matches patches
    y = pallas_matmul_bias_relu(patch_mat, w_mat, b)
    return y.reshape(N, Ho, Wo, Cout)


# ---------------------------------------------------------------------------
# Geometry glue (project_verts / vert_align / ico_sphere)
# ---------------------------------------------------------------------------
def project_verts(verts, P, eps=1e-1):
    N, V, _ = verts.shape
    ones = jnp.ones((N, V, 1), verts.dtype)
    verts_hom = jnp.concatenate([verts, ones], axis=2)
    cam = jnp.einsum("nvk,nlk->nvl", verts_hom, P)  # bmm(verts_hom, P^T)
    w = cam[..., 3:]
    w_sign = jnp.where(w >= 0.0, 1.0, -1.0)
    w = w_sign * jnp.maximum(jnp.abs(w), eps)
    return cam[..., :3] / w


def grid_sample_bilinear(feat, grid_xy):
    # TODO(synk): data-dependent bilinear gather (F.grid_sample / vert_align)
    # stays in JAX glue; a Pallas version would need an in-kernel DMA gather.
    # align_corners=True, padding_mode="zeros" (pytorch3d vert_align defaults).
    N, H, W, C = feat.shape
    x = (grid_xy[..., 0] + 1.0) * 0.5 * (W - 1)
    y = (grid_xy[..., 1] + 1.0) * 0.5 * (H - 1)
    x0 = jnp.floor(x)
    y0 = jnp.floor(y)
    x1 = x0 + 1.0
    y1 = y0 + 1.0
    wx1 = x - x0
    wx0 = 1.0 - wx1
    wy1 = y - y0
    wy0 = 1.0 - wy1
    batch_idx = jnp.arange(N)[:, None]

    def gather(ix, iy):
        valid = (ix >= 0) & (ix <= W - 1) & (iy >= 0) & (iy <= H - 1)
        ixc = jnp.clip(ix, 0, W - 1).astype(jnp.int32)
        iyc = jnp.clip(iy, 0, H - 1).astype(jnp.int32)
        vals = feat[batch_idx, iyc, ixc]  # (N, V, C)
        return jnp.where(valid[..., None], vals, 0.0)

    return (gather(x0, y0) * (wx0 * wy0)[..., None]
            + gather(x1, y0) * (wx1 * wy0)[..., None]
            + gather(x0, y1) * (wx0 * wy1)[..., None]
            + gather(x1, y1) * (wx1 * wy1)[..., None])


def icosahedron():
    t = (1.0 + math.sqrt(5.0)) / 2.0
    verts = [(-1, t, 0), (1, t, 0), (-1, -t, 0), (1, -t, 0),
             (0, -1, t), (0, 1, t), (0, -1, -t), (0, 1, -t),
             (t, 0, -1), (t, 0, 1), (-t, 0, -1), (-t, 0, 1)]
    v = jnp.array(verts, jnp.float32)
    v = v / jnp.linalg.norm(v, axis=1, keepdims=True)  # unit sphere
    f = jnp.array(ICO_FACES_LIST, jnp.int32)
    return v, f


def adjacency_from_faces(faces_list, num_verts):
    adj = [[0.0] * num_verts for _ in range(num_verts)]
    for (a, b, c) in faces_list:
        for i, j in ((a, b), (b, c), (c, a)):
            adj[i][j] = 1.0
            adj[j][i] = 1.0
    return jnp.array(adj, jnp.float32)


# ---------------------------------------------------------------------------
# Parameters (deterministic synthetic init)
# ---------------------------------------------------------------------------
def init_params(key):
    keys = list(jax.random.split(key, 64))
    kit = iter(keys)

    def nrm(shape, scale=0.1):
        return jax.random.normal(next(kit), shape, dtype=jnp.float32) * scale

    feat_total = sum(BACKBONE_FEAT_DIMS)  # COMPUTED_INPUT_CHANNELS
    params = {
        "conv1_w": nrm((3, 3, 3, BACKBONE_FEAT_DIMS[0])),
        "conv1_b": jnp.zeros((BACKBONE_FEAT_DIMS[0],), jnp.float32),
        "conv2_w": nrm((3, 3, BACKBONE_FEAT_DIMS[0], BACKBONE_FEAT_DIMS[1])),
        "conv2_b": jnp.zeros((BACKBONE_FEAT_DIMS[1],), jnp.float32),
        "stages": [],
    }
    for s in range(NUM_STAGES):
        vert_feat_dim = 0 if s == 0 else HIDDEN
        stage = {
            "bottleneck_w": nrm((feat_total, HIDDEN)),
            "bottleneck_b": jnp.zeros((HIDDEN,), jnp.float32),
            "offset_w": nrm((HIDDEN + 3, 3)),
            "offset_b": jnp.zeros((3,), jnp.float32),
            "gconvs": [],
        }
        for g in range(STAGE_DEPTH):
            in_dim = (HIDDEN + vert_feat_dim + 3) if g == 0 else (HIDDEN + 3)
            stage["gconvs"].append({
                "w0": nrm((in_dim, HIDDEN)),
                "b0": jnp.zeros((HIDDEN,), jnp.float32),
                "w1": nrm((in_dim, HIDDEN)),
                "b1": jnp.zeros((HIDDEN,), jnp.float32),
            })
        params["stages"].append(stage)
    return params


# ---------------------------------------------------------------------------
# SphereInitHead.forward
# ---------------------------------------------------------------------------
def sphere_init_head_forward(imgs_nchw, params):
    N = imgs_nchw.shape[0]
    x = jnp.transpose(imgs_nchw, (0, 2, 3, 1)).astype(jnp.float32)  # NCHW -> NHWC

    # backbone(imgs) -> list of multi-scale feature maps
    f1 = conv3x3_s2_relu(x, params["conv1_w"], params["conv1_b"])
    f2 = conv3x3_s2_relu(f1, params["conv2_w"], params["conv2_b"])
    img_feats = [f1, f2]

    # P = K[None].repeat(N, 1, 1)
    P = jnp.broadcast_to(BLENDER_K, (N, 4, 4))

    # init_meshes = ico_sphere(level).extend(N)
    ico_verts, ico_faces = icosahedron()
    V = ico_verts.shape[0]
    verts = jnp.broadcast_to(ico_verts, (N, V, 3))
    A = adjacency_from_faces(ICO_FACES_LIST, V)   # single (V, V); block-diag
    # structure over the batch handled by the per-mesh grid (no kron).

    flip_y = jnp.array([1.0, -1.0, 1.0], jnp.float32)  # image-space y flip
    vert_feats = None                                  # (N, V, H) or None
    refined_meshes = []

    for stage in params["stages"]:
        proj = project_verts(verts, P)                 # (N, V, 3) NDC coords
        grid = (proj * flip_y)[..., :2]
        samp = jnp.concatenate(
            [grid_sample_bilinear(f, grid) for f in img_feats], axis=-1)

        # fused: bottleneck + GraphConvs + tanh offset head + verts offset add
        # (one pallas_call; new verts come straight out of the kernel).
        verts, vert_feats = pallas_mesh_stage(stage, samp, proj, verts,
                                              vert_feats, A)
        refined_meshes.append((verts, ico_faces))

    return None, refined_meshes


# ---------------------------------------------------------------------------
if __name__ == "__main__":
    key = jax.random.PRNGKey(0)
    k_img, k_par = jax.random.split(key)
    imgs = jax.random.normal(k_img, (2, 3, 32, 32), dtype=jnp.float32)  # NCHW
    params = init_params(k_par)

    fwd = jax.jit(sphere_init_head_forward)
    voxels_none, refined = fwd(imgs, params)

    for v, f in refined:
        jax.block_until_ready(v)
        jax.block_until_ready(f)
    assert voxels_none is None
    assert refined[-1][0].shape == (2, 12, 3)
    print("KERNEL_OK")
</pallas_src>

<mosaic_0001>
module attributes {stable_mosaic.version = 11 : i64} {
  func.func @_matmul_bias_relu_kernel(%arg0: i32, %arg1: memref<256x27xbf16, #tpu.memory_space<vmem>>, %arg2: memref<27x8xbf16, #tpu.memory_space<vmem>>, %arg3: memref<1x8xf32, #tpu.memory_space<vmem>>, %arg4: memref<256x8xf32, #tpu.memory_space<vmem>>) attributes {dimension_semantics = [#tpu.dimension_semantics<parallel>], iteration_bounds = array<i64: 2>, scalar_prefetch = 0 : i64, scratch_operands = 0 : i64, tpu.core_type = #tpu.core_type<tc>, window_params = [{transform_indices = @transform_0, window_bounds = array<i64: 256, 27>}, {pipeline_mode = #tpu.pipeline_mode<synchronous>, transform_indices = @transform_1, window_bounds = array<i64: 27, 8>}, {pipeline_mode = #tpu.pipeline_mode<synchronous>, transform_indices = @transform_2, window_bounds = array<i64: 1, 8>}, {transform_indices = @transform_3, window_bounds = array<i64: 256, 8>}]} {
    %c0 = arith.constant 0 : index
    %c0_0 = arith.constant 0 : index
    %0 = vector.load %arg1[%c0, %c0_0] : memref<256x27xbf16, #tpu.memory_space<vmem>>, vector<256x27xbf16>
    %c0_1 = arith.constant 0 : index
    %c0_2 = arith.constant 0 : index
    %1 = vector.load %arg2[%c0_1, %c0_2] : memref<27x8xbf16, #tpu.memory_space<vmem>>, vector<27x8xbf16>
    %cst = arith.constant dense<0.000000e+00> : vector<256x8xf32>
    %2 = tpu.matmul %0, %1, %cst {dimension_numbers = #tpu.dot_dimension_numbers<[1], [0], [0], [1], [0, 0, 1, 1], [], []>} : vector<256x27xbf16>, vector<27x8xbf16>, vector<256x8xf32> -> vector<256x8xf32>
    %c0_3 = arith.constant 0 : index
    %c0_4 = arith.constant 0 : index
    %3 = vector.load %arg3[%c0_3, %c0_4] : memref<1x8xf32, #tpu.memory_space<vmem>>, vector<1x8xf32>
    %4 = vector.broadcast %3 : vector<1x8xf32> to vector<256x8xf32>
    %5 = arith.addf %2, %4 : vector<256x8xf32>
    %cst_5 = arith.constant 0.000000e+00 : f32
    %6 = vector.broadcast %cst_5 : f32 to vector<256x8xf32>
    %7 = arith.maximumf %5, %6 : vector<256x8xf32>
    %c0_6 = arith.constant 0 : index
    %c0_7 = arith.constant 0 : index
    %8 = vector.load %arg4[%c0_6, %c0_7] : memref<256x8xf32, #tpu.memory_space<vmem>>, vector<256x8xf32>
    tpu.vector_store %arg4[%c0_6, %c0_7], %7 {strides = array<i32>} : memref<256x8xf32, #tpu.memory_space<vmem>>, vector<256x8xf32>,
    return
  }
  func.func @transform_0(%arg0: i32) -> (i32, i32) {
    %c0_i32 = arith.constant 0 : i32
    %c0_i32_0 = arith.constant 0 : i32
    return %arg0, %c0_i32 : i32, i32
  }
  func.func @transform_1(%arg0: i32) -> (i32, i32) {
    %c0_i32 = arith.constant 0 : i32
    %c0_i32_0 = arith.constant 0 : i32
    %c0_i32_1 = arith.constant 0 : i32
    return %c0_i32, %c0_i32_0 : i32, i32
  }
  func.func @transform_2(%arg0: i32) -> (i32, i32) {
    %c0_i32 = arith.constant 0 : i32
    %c0_i32_0 = arith.constant 0 : i32
    %c0_i32_1 = arith.constant 0 : i32
    return %c0_i32, %c0_i32_0 : i32, i32
  }
  func.func @transform_3(%arg0: i32) -> (i32, i32) {
    %c0_i32 = arith.constant 0 : i32
    %c0_i32_0 = arith.constant 0 : i32
    return %arg0, %c0_i32 : i32, i32
  }
}

module attributes {stable_mosaic.version = 11 : i64} {
  func.func @_matmul_bias_relu_kernel(%arg0: i32, %arg1: memref<64x72xbf16, #tpu.memory_space<vmem>>, %arg2: memref<72x16xbf16, #tpu.memory_space<vmem>>, %arg3: memref<1x16xf32, #tpu.memory_space<vmem>>, %arg4: memref<64x16xf32, #tpu.memory_space<vmem>>) attributes {dimension_semantics = [#tpu.dimension_semantics<parallel>], iteration_bounds = array<i64: 2>, scalar_prefetch = 0 : i64, scratch_operands = 0 : i64, tpu.core_type = #tpu.core_type<tc>, window_params = [{transform_indices = @transform_0, window_bounds = array<i64: 64, 72>}, {pipeline_mode = #tpu.pipeline_mode<synchronous>, transform_indices = @transform_1, window_bounds = array<i64: 72, 16>}, {pipeline_mode = #tpu.pipeline_mode<synchronous>, transform_indices = @transform_2, window_bounds = array<i64: 1, 16>}, {transform_indices = @transform_3, window_bounds = array<i64: 64, 16>}]} {
    %c0 = arith.constant 0 : index
    %c0_0 = arith.constant 0 : index
    %0 = vector.load %arg1[%c0, %c0_0] : memref<64x72xbf16, #tpu.memory_space<vmem>>, vector<64x72xbf16>
    %c0_1 = arith.constant 0 : index
    %c0_2 = arith.constant 0 : index
    %1 = vector.load %arg2[%c0_1, %c0_2] : memref<72x16xbf16, #tpu.memory_space<vmem>>, vector<72x16xbf16>
    %cst = arith.constant dense<0.000000e+00> : vector<64x16xf32>
    %2 = tpu.matmul %0, %1, %cst {dimension_numbers = #tpu.dot_dimension_numbers<[1], [0], [0], [1], [0, 0, 1, 1], [], []>} : vector<64x72xbf16>, vector<72x16xbf16>, vector<64x16xf32> -> vector<64x16xf32>
    %c0_3 = arith.constant 0 : index
    %c0_4 = arith.constant 0 : index
    %3 = vector.load %arg3[%c0_3, %c0_4] : memref<1x16xf32, #tpu.memory_space<vmem>>, vector<1x16xf32>
    %4 = vector.broadcast %3 : vector<1x16xf32> to vector<64x16xf32>
    %5 = arith.addf %2, %4 : vector<64x16xf32>
    %cst_5 = arith.constant 0.000000e+00 : f32
    %6 = vector.broadcast %cst_5 : f32 to vector<64x16xf32>
    %7 = arith.maximumf %5, %6 : vector<64x16xf32>
    %c0_6 = arith.constant 0 : index
    %c0_7 = arith.constant 0 : index
    %8 = vector.load %arg4[%c0_6, %c0_7] : memref<64x16xf32, #tpu.memory_space<vmem>>, vector<64x16xf32>
    tpu.vector_store %arg4[%c0_6, %c0_7], %7 {strides = array<i32>} : memref<64x16xf32, #tpu.memory_space<vmem>>, vector<64x16xf32>,
    return
  }
  func.func @transform_0(%arg0: i32) -> (i32, i32) {
    %c0_i32 = arith.constant 0 : i32
    %c0_i32_0 = arith.constant 0 : i32
    return %arg0, %c0_i32 : i32, i32
  }
  func.func @transform_1(%arg0: i32) -> (i32, i32) {
    %c0_i32 = arith.constant 0 : i32
    %c0_i32_0 = arith.constant 0 : i32
    %c0_i32_1 = arith.constant 0 : i32
    return %c0_i32, %c0_i32_0 : i32, i32
  }
  func.func @transform_2(%arg0: i32) -> (i32, i32) {
    %c0_i32 = arith.constant 0 : i32
    %c0_i32_0 = arith.constant 0 : i32
    %c0_i32_1 = arith.constant 0 : i32
    return %c0_i32, %c0_i32_0 : i32, i32
  }
  func.func @transform_3(%arg0: i32) -> (i32, i32) {
    %c0_i32 = arith.constant 0 : i32
    %c0_i32_0 = arith.constant 0 : i32
    return %arg0, %c0_i32 : i32, i32
  }
}

module attributes {stable_mosaic.version = 11 : i64} {
  func.func @_stage_kernel(%arg0: i32, %arg1: memref<1x12x24xf32, #tpu.memory_space<vmem>>, %arg2: memref<1x12x3xf32, #tpu.memory_space<vmem>>, %arg3: memref<1x12x3xf32, #tpu.memory_space<vmem>>, %arg4: memref<12x12xf32, #tpu.memory_space<vmem>>, %arg5: memref<24x32xf32, #tpu.memory_space<vmem>>, %arg6: memref<1x32xf32, #tpu.memory_space<vmem>>, %arg7: memref<32x64xf32, #tpu.memory_space<vmem>>, %arg8: memref<3x64xf32, #tpu.memory_space<vmem>>, %arg9: memref<1x64xf32, #tpu.memory_space<vmem>>, %arg10: memref<32x64xf32, #tpu.memory_space<vmem>>, %arg11: memref<3x64xf32, #tpu.memory_space<vmem>>, %arg12: memref<1x64xf32, #tpu.memory_space<vmem>>, %arg13: memref<32x3xf32, #tpu.memory_space<vmem>>, %arg14: memref<3x3xf32, #tpu.memory_space<vmem>>, %arg15: memref<1x3xf32, #tpu.memory_space<vmem>>, %arg16: memref<1x12x128xf32, #tpu.memory_space<vmem>>) attributes {dimension_semantics = [#tpu.dimension_semantics<parallel>], iteration_bounds = array<i64: 2>, scalar_prefetch = 0 : i64, scratch_operands = 0 : i64, tpu.core_type = #tpu.core_type<tc>, window_params = [{transform_indices = @transform_0, window_bounds = array<i64: 1, 12, 24>}, {transform_indices = @transform_1, window_bounds = array<i64: 1, 12, 3>}, {transform_indices = @transform_2, window_bounds = array<i64: 1, 12, 3>}, {pipeline_mode = #tpu.pipeline_mode<synchronous>, transform_indices = @transform_3, window_bounds = array<i64: 12, 12>}, {pipeline_mode = #tpu.pipeline_mode<synchronous>, transform_indices = @transform_4, window_bounds = array<i64: 24, 32>}, {pipeline_mode = #tpu.pipeline_mode<synchronous>, transform_indices = @transform_5, window_bounds = array<i64: 1, 32>}, {pipeline_mode = #tpu.pipeline_mode<synchronous>, transform_indices = @transform_6, window_bounds = array<i64: 32, 64>}, {pipeline_mode = #tpu.pipeline_mode<synchronous>, transform_indices = @transform_7, window_bounds = array<i64: 3, 64>}, {pipeline_mode = #tpu.pipeline_mode<synchronous>, transform_indices = @transform_8, window_bounds = array<i64: 1, 64>}, {pipeline_mode = #tpu.pipeline_mode<synchronous>, transform_indices = @transform_9, window_bounds = array<i64: 32, 64>}, {pipeline_mode = #tpu.pipeline_mode<synchronous>, transform_indices = @transform_10, window_bounds = array<i64: 3, 64>}, {pipeline_mode = #tpu.pipeline_mode<synchronous>, transform_indices = @transform_11, window_bounds = array<i64: 1, 64>}, {pipeline_mode = #tpu.pipeline_mode<synchronous>, transform_indices = @transform_12, window_bounds = array<i64: 32, 3>}, {pipeline_mode = #tpu.pipeline_mode<synchronous>, transform_indices = @transform_13, window_bounds = array<i64: 3, 3>}, {pipeline_mode = #tpu.pipeline_mode<synchronous>, transform_indices = @transform_14, window_bounds = array<i64: 1, 3>}, {transform_indices = @transform_15, window_bounds = array<i64: 1, 12, 128>}]} {
    %c0 = arith.constant 0 : index
    %c0_0 = arith.constant 0 : index
    %c0_1 = arith.constant 0 : index
    %0 = vector.load %arg1[%c0, %c0_0, %c0_1] : memref<1x12x24xf32, #tpu.memory_space<vmem>>, vector<1x12x24xf32>
    %1 = vector.shape_cast %0 : vector<1x12x24xf32> to vector<12x24xf32>
    %c0_2 = arith.constant 0 : index
    %c0_3 = arith.constant 0 : index
    %c0_4 = arith.constant 0 : index
    %2 = vector.load %arg2[%c0_2, %c0_3, %c0_4] : memref<1x12x3xf32, #tpu.memory_space<vmem>>, vector<1x12x3xf32>
    %3 = vector.shape_cast %2 : vector<1x12x3xf32> to vector<12x3xf32>
    %c0_5 = arith.constant 0 : index
    %c0_6 = arith.constant 0 : index
    %c0_7 = arith.constant 0 : index
    %4 = vector.load %arg3[%c0_5, %c0_6, %c0_7] : memref<1x12x3xf32, #tpu.memory_space<vmem>>, vector<1x12x3xf32>
    %5 = vector.shape_cast %4 : vector<1x12x3xf32> to vector<12x3xf32>
    %c0_8 = arith.constant 0 : index
    %c0_9 = arith.constant 0 : index
    %6 = vector.load %arg4[%c0_8, %c0_9] : memref<12x12xf32, #tpu.memory_space<vmem>>, vector<12x12xf32>
    %c0_10 = arith.constant 0 : index
    %c0_11 = arith.constant 0 : index
    %7 = vector.load %arg5[%c0_10, %c0_11] : memref<24x32xf32, #tpu.memory_space<vmem>>, vector<24x32xf32>
    %cst = arith.constant dense<0.000000e+00> : vector<12x32xf32>
    %8 = tpu.matmul %1, %7, %cst {dimension_numbers = #tpu.dot_dimension_numbers<[1], [0], [0], [1], [0, 0, 1, 1], [], []>} : vector<12x24xf32>, vector<24x32xf32>, vector<12x32xf32> -> vector<12x32xf32>
    %c0_12 = arith.constant 0 : index
    %c0_13 = arith.constant 0 : index
    %9 = vector.load %arg6[%c0_12, %c0_13] : memref<1x32xf32, #tpu.memory_space<vmem>>, vector<1x32xf32>
    %10 = vector.broadcast %9 : vector<1x32xf32> to vector<12x32xf32>
    %11 = arith.addf %8, %10 : vector<12x32xf32>
    %cst_14 = arith.constant 0.000000e+00 : f32
    %12 = vector.broadcast %cst_14 : f32 to vector<12x32xf32>
    %13 = arith.maximumf %11, %12 : vector<12x32xf32>
    %c0_15 = arith.constant 0 : index
    %c0_16 = arith.constant 0 : index
    %14 = vector.load %arg7[%c0_15, %c0_16] : memref<32x64xf32, #tpu.memory_space<vmem>>, vector<32x64xf32>
    %cst_17 = arith.constant dense<0.000000e+00> : vector<12x64xf32>
    %15 = tpu.matmul %13, %14, %cst_17 {dimension_numbers = #tpu.dot_dimension_numbers<[1], [0], [0], [1], [0, 0, 1, 1], [], []>} : vector<12x32xf32>, vector<32x64xf32>, vector<12x64xf32> -> vector<12x64xf32>
    %c0_18 = arith.constant 0 : index
    %c0_19 = arith.constant 0 : index
    %16 = vector.load %arg8[%c0_18, %c0_19] : memref<3x64xf32, #tpu.memory_space<vmem>>, vector<3x64xf32>
    %17 = vector.extract_strided_slice %3 {offsets = [0, 0], sizes = [12, 1], strides = [1, 1]} : vector<12x3xf32> to vector<12x1xf32>
    %18 = vector.extract_strided_slice %16 {offsets = [0, 0], sizes = [1, 64], strides = [1, 1]} : vector<3x64xf32> to vector<1x64xf32>
    %19 = vector.broadcast %17 : vector<12x1xf32> to vector<12x64xf32>
    %20 = vector.broadcast %18 : vector<1x64xf32> to vector<12x64xf32>
    %21 = arith.mulf %19, %20 : vector<12x64xf32>
    %22 = vector.extract_strided_slice %3 {offsets = [0, 1], sizes = [12, 1], strides = [1, 1]} : vector<12x3xf32> to vector<12x1xf32>
    %23 = vector.extract_strided_slice %16 {offsets = [1, 0], sizes = [1, 64], strides = [1, 1]} : vector<3x64xf32> to vector<1x64xf32>
    %24 = vector.broadcast %22 : vector<12x1xf32> to vector<12x64xf32>
    %25 = vector.broadcast %23 : vector<1x64xf32> to vector<12x64xf32>
    %26 = arith.mulf %24, %25 : vector<12x64xf32>
    %27 = arith.addf %21, %26 : vector<12x64xf32>
    %28 = vector.extract_strided_slice %3 {offsets = [0, 2], sizes = [12, 1], strides = [1, 1]} : vector<12x3xf32> to vector<12x1xf32>
    %29 = vector.extract_strided_slice %16 {offsets = [2, 0], sizes = [1, 64], strides = [1, 1]} : vector<3x64xf32> to vector<1x64xf32>
    %30 = vector.broadcast %28 : vector<12x1xf32> to vector<12x64xf32>
    %31 = vector.broadcast %29 : vector<1x64xf32> to vector<12x64xf32>
    %32 = arith.mulf %30, %31 : vector<12x64xf32>
    %33 = arith.addf %27, %32 : vector<12x64xf32>
    %34 = arith.addf %15, %33 : vector<12x64xf32>
    %c0_20 = arith.constant 0 : index
    %c0_21 = arith.constant 0 : index
    %35 = vector.load %arg9[%c0_20, %c0_21] : memref<1x64xf32, #tpu.memory_space<vmem>>, vector<1x64xf32>
    %36 = vector.broadcast %35 : vector<1x64xf32> to vector<12x64xf32>
    %37 = arith.addf %34, %36 : vector<12x64xf32>
    %38 = vector.extract_strided_slice %37 {offsets = [0, 0], sizes = [12, 32], strides = [1, 1]} : vector<12x64xf32> to vector<12x32xf32>
    %39 = vector.extract_strided_slice %37 {offsets = [0, 32], sizes = [12, 32], strides = [1, 1]} : vector<12x64xf32> to vector<12x32xf32>
    %cst_22 = arith.constant dense<0.000000e+00> : vector<12x32xf32>
    %40 = tpu.matmul %6, %39, %cst_22 {dimension_numbers = #tpu.dot_dimension_numbers<[1], [0], [0], [1], [0, 0, 1, 1], [], []>} : vector<12x12xf32>, vector<12x32xf32>, vector<12x32xf32> -> vector<12x32xf32>
    %41 = arith.addf %38, %40 : vector<12x32xf32>
    %cst_23 = arith.constant 0.000000e+00 : f32
    %42 = vector.broadcast %cst_23 : f32 to vector<12x32xf32>
    %43 = arith.maximumf %41, %42 : vector<12x32xf32>
    %c0_24 = arith.constant 0 : index
    %c0_25 = arith.constant 0 : index
    %44 = vector.load %arg10[%c0_24, %c0_25] : memref<32x64xf32, #tpu.memory_space<vmem>>, vector<32x64xf32>
    %cst_26 = arith.constant dense<0.000000e+00> : vector<12x64xf32>
    %45 = tpu.matmul %43, %44, %cst_26 {dimension_numbers = #tpu.dot_dimension_numbers<[1], [0], [0], [1], [0, 0, 1, 1], [], []>} : vector<12x32xf32>, vector<32x64xf32>, vector<12x64xf32> -> vector<12x64xf32>
    %c0_27 = arith.constant 0 : index
    %c0_28 = arith.constant 0 : index
    %46 = vector.load %arg11[%c0_27, %c0_28] : memref<3x64xf32, #tpu.memory_space<vmem>>, vector<3x64xf32>
    %47 = vector.extract_strided_slice %3 {offsets = [0, 0], sizes = [12, 1], strides = [1, 1]} : vector<12x3xf32> to vector<12x1xf32>
    %48 = vector.extract_strided_slice %46 {offsets = [0, 0], sizes = [1, 64], strides = [1, 1]} : vector<3x64xf32> to vector<1x64xf32>
    %49 = vector.broadcast %47 : vector<12x1xf32> to vector<12x64xf32>
    %50 = vector.broadcast %48 : vector<1x64xf32> to vector<12x64xf32>
    %51 = arith.mulf %49, %50 : vector<12x64xf32>
    %52 = vector.extract_strided_slice %3 {offsets = [0, 1], sizes = [12, 1], strides = [1, 1]} : vector<12x3xf32> to vector<12x1xf32>
    %53 = vector.extract_strided_slice %46 {offsets = [1, 0], sizes = [1, 64], strides = [1, 1]} : vector<3x64xf32> to vector<1x64xf32>
    %54 = vector.broadcast %52 : vector<12x1xf32> to vector<12x64xf32>
    %55 = vector.broadcast %53 : vector<1x64xf32> to vector<12x64xf32>
    %56 = arith.mulf %54, %55 : vector<12x64xf32>
    %57 = arith.addf %51, %56 : vector<12x64xf32>
    %58 = vector.extract_strided_slice %3 {offsets = [0, 2], sizes = [12, 1], strides = [1, 1]} : vector<12x3xf32> to vector<12x1xf32>
    %59 = vector.extract_strided_slice %46 {offsets = [2, 0], sizes = [1, 64], strides = [1, 1]} : vector<3x64xf32> to vector<1x64xf32>
    %60 = vector.broadcast %58 : vector<12x1xf32> to vector<12x64xf32>
    %61 = vector.broadcast %59 : vector<1x64xf32> to vector<12x64xf32>
    %62 = arith.mulf %60, %61 : vector<12x64xf32>
    %63 = arith.addf %57, %62 : vector<12x64xf32>
    %64 = arith.addf %45, %63 : vector<12x64xf32>
    %c0_29 = arith.constant 0 : index
    %c0_30 = arith.constant 0 : index
    %65 = vector.load %arg12[%c0_29, %c0_30] : memref<1x64xf32, #tpu.memory_space<vmem>>, vector<1x64xf32>
    %66 = vector.broadcast %65 : vector<1x64xf32> to vector<12x64xf32>
    %67 = arith.addf %64, %66 : vector<12x64xf32>
    %68 = vector.extract_strided_slice %67 {offsets = [0, 0], sizes = [12, 32], strides = [1, 1]} : vector<12x64xf32> to vector<12x32xf32>
    %69 = vector.extract_strided_slice %67 {offsets = [0, 32], sizes = [12, 32], strides = [1, 1]} : vector<12x64xf32> to vector<12x32xf32>
    %cst_31 = arith.constant dense<0.000000e+00> : vector<12x32xf32>
    %70 = tpu.matmul %6, %69, %cst_31 {dimension_numbers = #tpu.dot_dimension_numbers<[1], [0], [0], [1], [0, 0, 1, 1], [], []>} : vector<12x12xf32>, vector<12x32xf32>, vector<12x32xf32> -> vector<12x32xf32>
    %71 = arith.addf %68, %70 : vector<12x32xf32>
    %cst_32 = arith.constant 0.000000e+00 : f32
    %72 = vector.broadcast %cst_32 : f32 to vector<12x32xf32>
    %73 = arith.maximumf %71, %72 : vector<12x32xf32>
    %c0_33 = arith.constant 0 : index
    %c0_34 = arith.constant 0 : index
    %74 = vector.load %arg13[%c0_33, %c0_34] : memref<32x3xf32, #tpu.memory_space<vmem>>, vector<32x3xf32>
    %cst_35 = arith.constant dense<0.000000e+00> : vector<12x3xf32>
    %75 = tpu.matmul %73, %74, %cst_35 {dimension_numbers = #tpu.dot_dimension_numbers<[1], [0], [0], [1], [0, 0, 1, 1], [], []>} : vector<12x32xf32>, vector<32x3xf32>, vector<12x3xf32> -> vector<12x3xf32>
    %c0_36 = arith.constant 0 : index
    %c0_37 = arith.constant 0 : index
    %76 = vector.load %arg14[%c0_36, %c0_37] : memref<3x3xf32, #tpu.memory_space<vmem>>, vector<3x3xf32>
    %77 = vector.extract_strided_slice %3 {offsets = [0, 0], sizes = [12, 1], strides = [1, 1]} : vector<12x3xf32> to vector<12x1xf32>
    %78 = vector.extract_strided_slice %76 {offsets = [0, 0], sizes = [1, 3], strides = [1, 1]} : vector<3x3xf32> to vector<1x3xf32>
    %79 = vector.broadcast %77 : vector<12x1xf32> to vector<12x3xf32>
    %80 = vector.broadcast %78 : vector<1x3xf32> to vector<12x3xf32>
    %81 = arith.mulf %79, %80 : vector<12x3xf32>
    %82 = vector.extract_strided_slice %3 {offsets = [0, 1], sizes = [12, 1], strides = [1, 1]} : vector<12x3xf32> to vector<12x1xf32>
    %83 = vector.extract_strided_slice %76 {offsets = [1, 0], sizes = [1, 3], strides = [1, 1]} : vector<3x3xf32> to vector<1x3xf32>
    %84 = vector.broadcast %82 : vector<12x1xf32> to vector<12x3xf32>
    %85 = vector.broadcast %83 : vector<1x3xf32> to vector<12x3xf32>
    %86 = arith.mulf %84, %85 : vector<12x3xf32>
    %87 = arith.addf %81, %86 : vector<12x3xf32>
    %88 = vector.extract_strided_slice %3 {offsets = [0, 2], sizes = [12, 1], strides = [1, 1]} : vector<12x3xf32> to vector<12x1xf32>
    %89 = vector.extract_strided_slice %76 {offsets = [2, 0], sizes = [1, 3], strides = [1, 1]} : vector<3x3xf32> to vector<1x3xf32>
    %90 = vector.broadcast %88 : vector<12x1xf32> to vector<12x3xf32>
    %91 = vector.broadcast %89 : vector<1x3xf32> to vector<12x3xf32>
    %92 = arith.mulf %90, %91 : vector<12x3xf32>
    %93 = arith.addf %87, %92 : vector<12x3xf32>
    %94 = arith.addf %75, %93 : vector<12x3xf32>
    %c0_38 = arith.constant 0 : index
    %c0_39 = arith.constant 0 : index
    %95 = vector.load %arg15[%c0_38, %c0_39] : memref<1x3xf32, #tpu.memory_space<vmem>>, vector<1x3xf32>
    %96 = vector.broadcast %95 : vector<1x3xf32> to vector<12x3xf32>
    %97 = arith.addf %94, %96 : vector<12x3xf32>
    %98 = math.tanh %97 : vector<12x3xf32>
    %99 = arith.addf %5, %98 : vector<12x3xf32>
    %cst_40 = arith.constant 0.000000e+00 : f32
    %100 = vector.broadcast %cst_40 : f32 to vector<12x93xf32>
    %101 = tpu.concatenate %99, %73, %100 in 1 : vector<12x3xf32>, vector<12x32xf32>, vector<12x93xf32> -> vector<12x128xf32>
    %c0_41 = arith.constant 0 : index
    %c0_42 = arith.constant 0 : index
    %c0_43 = arith.constant 0 : index
    %102 = vector.load %arg16[%c0_41, %c0_42, %c0_43] : memref<1x12x128xf32, #tpu.memory_space<vmem>>, vector<1x12x128xf32>
    %103 = vector.shape_cast %102 : vector<1x12x128xf32> to vector<12x128xf32>
    %104 = vector.shape_cast %101 : vector<12x128xf32> to vector<1x12x128xf32>
    tpu.vector_store %arg16[%c0_41, %c0_42, %c0_43], %104 {strides = array<i32>} : memref<1x12x128xf32, #tpu.memory_space<vmem>>, vector<1x12x128xf32>,
    return
  }
  func.func @transform_0(%arg0: i32) -> (i32, i32, i32) {
    %c0_i32 = arith.constant 0 : i32
    %c0_i32_0 = arith.constant 0 : i32
    %c0_i32_1 = arith.constant 0 : i32
    return %arg0, %c0_i32, %c0_i32_0 : i32, i32, i32
  }
  func.func @transform_1(%arg0: i32) -> (i32, i32, i32) {
    %c0_i32 = arith.constant 0 : i32
    %c0_i32_0 = arith.constant 0 : i32
    %c0_i32_1 = arith.constant 0 : i32
    return %arg0, %c0_i32, %c0_i32_0 : i32, i32, i32
  }
  func.func @transform_2(%arg0: i32) -> (i32, i32, i32) {
    %c0_i32 = arith.constant 0 : i32
    %c0_i32_0 = arith.constant 0 : i32
    %c0_i32_1 = arith.constant 0 : i32
    return %arg0, %c0_i32, %c0_i32_0 : i32, i32, i32
  }
  func.func @transform_3(%arg0: i32) -> (i32, i32) {
    %c0_i32 = arith.constant 0 : i32
    %c0_i32_0 = arith.constant 0 : i32
    %c0_i32_1 = arith.constant 0 : i32
    return %c0_i32, %c0_i32_0 : i32, i32
  }
  func.func @transform_4(%arg0: i32) -> (i32, i32) {
    %c0_i32 = arith.constant 0 : i32
    %c0_i32_0 = arith.constant 0 : i32
    %c0_i32_1 = arith.constant 0 : i32
    return %c0_i32, %c0_i32_0 : i32, i32
  }
  func.func @transform_5(%arg0: i32) -> (i32, i32) {
    %c0_i32 = arith.constant 0 : i32
    %c0_i32_0 = arith.constant 0 : i32
    %c0_i32_1 = arith.constant 0 : i32
    return %c0_i32, %c0_i32_0 : i32, i32
  }
  func.func @transform_6(%arg0: i32) -> (i32, i32) {
    %c0_i32 = arith.constant 0 : i32
    %c0_i32_0 = arith.constant 0 : i32
    %c0_i32_1 = arith.constant 0 : i32
    return %c0_i32, %c0_i32_0 : i32, i32
  }
  func.func @transform_7(%arg0: i32) -> (i32, i32) {
    %c0_i32 = arith.constant 0 : i32
    %c0_i32_0 = arith.constant 0 : i32
    %c0_i32_1 = arith.constant 0 : i32
    return %c0_i32, %c0_i32_0 : i32, i32
  }
  func.func @transform_8(%arg0: i32) -> (i32, i32) {
    %c0_i32 = arith.constant 0 : i32
    %c0_i32_0 = arith.constant 0 : i32
    %c0_i32_1 = arith.constant 0 : i32
    return %c0_i32, %c0_i32_0 : i32, i32
  }
  func.func @transform_9(%arg0: i32) -> (i32, i32) {
    %c0_i32 = arith.constant 0 : i32
    %c0_i32_0 = arith.constant 0 : i32
    %c0_i32_1 = arith.constant 0 : i32
    return %c0_i32, %c0_i32_0 : i32, i32
  }
  func.func @transform_10(%arg0: i32) -> (i32, i32) {
    %c0_i32 = arith.constant 0 : i32
    %c0_i32_0 = arith.constant 0 : i32
    %c0_i32_1 = arith.constant 0 : i32
    return %c0_i32, %c0_i32_0 : i32, i32
  }
  func.func @transform_11(%arg0: i32) -> (i32, i32) {
    %c0_i32 = arith.constant 0 : i32
    %c0_i32_0 = arith.constant 0 : i32
    %c0_i32_1 = arith.constant 0 : i32
    return %c0_i32, %c0_i32_0 : i32, i32
  }
  func.func @transform_12(%arg0: i32) -> (i32, i32) {
    %c0_i32 = arith.constant 0 : i32
    %c0_i32_0 = arith.constant 0 : i32
    %c0_i32_1 = arith.constant 0 : i32
    return %c0_i32, %c0_i32_0 : i32, i32
  }
  func.func @transform_13(%arg0: i32) -> (i32, i32) {
    %c0_i32 = arith.constant 0 : i32
    %c0_i32_0 = arith.constant 0 : i32
    %c0_i32_1 = arith.constant 0 : i32
    return %c0_i32, %c0_i32_0 : i32, i32
  }
  func.func @transform_14(%arg0: i32) -> (i32, i32) {
    %c0_i32 = arith.constant 0 : i32
    %c0_i32_0 = arith.constant 0 : i32
    %c0_i32_1 = arith.constant 0 : i32
    return %c0_i32, %c0_i32_0 : i32, i32
  }
  func.func @transform_15(%arg0: i32) -> (i32, i32, i32) {
    %c0_i32 = arith.constant 0 : i32
    %c0_i32_0 = arith.constant 0 : i32
    %c0_i32_1 = arith.constant 0 : i32
    return %arg0, %c0_i32, %c0_i32_0 : i32, i32, i32
  }
}

module attributes {stable_mosaic.version = 11 : i64} {
  func.func @_stage_kernel(%arg0: i32, %arg1: memref<1x12x24xf32, #tpu.memory_space<vmem>>, %arg2: memref<1x12x3xf32, #tpu.memory_space<vmem>>, %arg3: memref<1x12x3xf32, #tpu.memory_space<vmem>>, %arg4: memref<1x12x32xf32, #tpu.memory_space<vmem>>, %arg5: memref<12x12xf32, #tpu.memory_space<vmem>>, %arg6: memref<24x32xf32, #tpu.memory_space<vmem>>, %arg7: memref<1x32xf32, #tpu.memory_space<vmem>>, %arg8: memref<32x64xf32, #tpu.memory_space<vmem>>, %arg9: memref<3x64xf32, #tpu.memory_space<vmem>>, %arg10: memref<32x64xf32, #tpu.memory_space<vmem>>, %arg11: memref<1x64xf32, #tpu.memory_space<vmem>>, %arg12: memref<32x64xf32, #tpu.memory_space<vmem>>, %arg13: memref<3x64xf32, #tpu.memory_space<vmem>>, %arg14: memref<1x64xf32, #tpu.memory_space<vmem>>, %arg15: memref<32x3xf32, #tpu.memory_space<vmem>>, %arg16: memref<3x3xf32, #tpu.memory_space<vmem>>, %arg17: memref<1x3xf32, #tpu.memory_space<vmem>>, %arg18: memref<1x12x128xf32, #tpu.memory_space<vmem>>) attributes {dimension_semantics = [#tpu.dimension_semantics<parallel>], iteration_bounds = array<i64: 2>, scalar_prefetch = 0 : i64, scratch_operands = 0 : i64, tpu.core_type = #tpu.core_type<tc>, window_params = [{transform_indices = @transform_0, window_bounds = array<i64: 1, 12, 24>}, {transform_indices = @transform_1, window_bounds = array<i64: 1, 12, 3>}, {transform_indices = @transform_2, window_bounds = array<i64: 1, 12, 3>}, {transform_indices = @transform_3, window_bounds = array<i64: 1, 12, 32>}, {pipeline_mode = #tpu.pipeline_mode<synchronous>, transform_indices = @transform_4, window_bounds = array<i64: 12, 12>}, {pipeline_mode = #tpu.pipeline_mode<synchronous>, transform_indices = @transform_5, window_bounds = array<i64: 24, 32>}, {pipeline_mode = #tpu.pipeline_mode<synchronous>, transform_indices = @transform_6, window_bounds = array<i64: 1, 32>}, {pipeline_mode = #tpu.pipeline_mode<synchronous>, transform_indices = @transform_7, window_bounds = array<i64: 32, 64>}, {pipeline_mode = #tpu.pipeline_mode<synchronous>, transform_indices = @transform_8, window_bounds = array<i64: 3, 64>}, {pipeline_mode = #tpu.pipeline_mode<synchronous>, transform_indices = @transform_9, window_bounds = array<i64: 32, 64>}, {pipeline_mode = #tpu.pipeline_mode<synchronous>, transform_indices = @transform_10, window_bounds = array<i64: 1, 64>}, {pipeline_mode = #tpu.pipeline_mode<synchronous>, transform_indices = @transform_11, window_bounds = array<i64: 32, 64>}, {pipeline_mode = #tpu.pipeline_mode<synchronous>, transform_indices = @transform_12, window_bounds = array<i64: 3, 64>}, {pipeline_mode = #tpu.pipeline_mode<synchronous>, transform_indices = @transform_13, window_bounds = array<i64: 1, 64>}, {pipeline_mode = #tpu.pipeline_mode<synchronous>, transform_indices = @transform_14, window_bounds = array<i64: 32, 3>}, {pipeline_mode = #tpu.pipeline_mode<synchronous>, transform_indices = @transform_15, window_bounds = array<i64: 3, 3>}, {pipeline_mode = #tpu.pipeline_mode<synchronous>, transform_indices = @transform_16, window_bounds = array<i64: 1, 3>}, {transform_indices = @transform_17, window_bounds = array<i64: 1, 12, 128>}]} {
    %c0 = arith.constant 0 : index
    %c0_0 = arith.constant 0 : index
    %c0_1 = arith.constant 0 : index
    %0 = vector.load %arg1[%c0, %c0_0, %c0_1] : memref<1x12x24xf32, #tpu.memory_space<vmem>>, vector<1x12x24xf32>
    %1 = vector.shape_cast %0 : vector<1x12x24xf32> to vector<12x24xf32>
    %c0_2 = arith.constant 0 : index
    %c0_3 = arith.constant 0 : index
    %c0_4 = arith.constant 0 : index
    %2 = vector.load %arg2[%c0_2, %c0_3, %c0_4] : memref<1x12x3xf32, #tpu.memory_space<vmem>>, vector<1x12x3xf32>
    %3 = vector.shape_cast %2 : vector<1x12x3xf32> to vector<12x3xf32>
    %c0_5 = arith.constant 0 : index
    %c0_6 = arith.constant 0 : index
    %c0_7 = arith.constant 0 : index
    %4 = vector.load %arg3[%c0_5, %c0_6, %c0_7] : memref<1x12x3xf32, #tpu.memory_space<vmem>>, vector<1x12x3xf32>
    %5 = vector.shape_cast %4 : vector<1x12x3xf32> to vector<12x3xf32>
    %c0_8 = arith.constant 0 : index
    %c0_9 = arith.constant 0 : index
    %6 = vector.load %arg5[%c0_8, %c0_9] : memref<12x12xf32, #tpu.memory_space<vmem>>, vector<12x12xf32>
    %c0_10 = arith.constant 0 : index
    %c0_11 = arith.constant 0 : index
    %7 = vector.load %arg6[%c0_10, %c0_11] : memref<24x32xf32, #tpu.memory_space<vmem>>, vector<24x32xf32>
    %cst = arith.constant dense<0.000000e+00> : vector<12x32xf32>
    %8 = tpu.matmul %1, %7, %cst {dimension_numbers = #tpu.dot_dimension_numbers<[1], [0], [0], [1], [0, 0, 1, 1], [], []>} : vector<12x24xf32>, vector<24x32xf32>, vector<12x32xf32> -> vector<12x32xf32>
    %c0_12 = arith.constant 0 : index
    %c0_13 = arith.constant 0 : index
    %9 = vector.load %arg7[%c0_12, %c0_13] : memref<1x32xf32, #tpu.memory_space<vmem>>, vector<1x32xf32>
    %10 = vector.broadcast %9 : vector<1x32xf32> to vector<12x32xf32>
    %11 = arith.addf %8, %10 : vector<12x32xf32>
    %cst_14 = arith.constant 0.000000e+00 : f32
    %12 = vector.broadcast %cst_14 : f32 to vector<12x32xf32>
    %13 = arith.maximumf %11, %12 : vector<12x32xf32>
    %c0_15 = arith.constant 0 : index
    %c0_16 = arith.constant 0 : index
    %14 = vector.load %arg8[%c0_15, %c0_16] : memref<32x64xf32, #tpu.memory_space<vmem>>, vector<32x64xf32>
    %cst_17 = arith.constant dense<0.000000e+00> : vector<12x64xf32>
    %15 = tpu.matmul %13, %14, %cst_17 {dimension_numbers = #tpu.dot_dimension_numbers<[1], [0], [0], [1], [0, 0, 1, 1], [], []>} : vector<12x32xf32>, vector<32x64xf32>, vector<12x64xf32> -> vector<12x64xf32>
    %c0_18 = arith.constant 0 : index
    %c0_19 = arith.constant 0 : index
    %16 = vector.load %arg9[%c0_18, %c0_19] : memref<3x64xf32, #tpu.memory_space<vmem>>, vector<3x64xf32>
    %17 = vector.extract_strided_slice %3 {offsets = [0, 0], sizes = [12, 1], strides = [1, 1]} : vector<12x3xf32> to vector<12x1xf32>
    %18 = vector.extract_strided_slice %16 {offsets = [0, 0], sizes = [1, 64], strides = [1, 1]} : vector<3x64xf32> to vector<1x64xf32>
    %19 = vector.broadcast %17 : vector<12x1xf32> to vector<12x64xf32>
    %20 = vector.broadcast %18 : vector<1x64xf32> to vector<12x64xf32>
    %21 = arith.mulf %19, %20 : vector<12x64xf32>
    %22 = vector.extract_strided_slice %3 {offsets = [0, 1], sizes = [12, 1], strides = [1, 1]} : vector<12x3xf32> to vector<12x1xf32>
    %23 = vector.extract_strided_slice %16 {offsets = [1, 0], sizes = [1, 64], strides = [1, 1]} : vector<3x64xf32> to vector<1x64xf32>
    %24 = vector.broadcast %22 : vector<12x1xf32> to vector<12x64xf32>
    %25 = vector.broadcast %23 : vector<1x64xf32> to vector<12x64xf32>
    %26 = arith.mulf %24, %25 : vector<12x64xf32>
    %27 = arith.addf %21, %26 : vector<12x64xf32>
    %28 = vector.extract_strided_slice %3 {offsets = [0, 2], sizes = [12, 1], strides = [1, 1]} : vector<12x3xf32> to vector<12x1xf32>
    %29 = vector.extract_strided_slice %16 {offsets = [2, 0], sizes = [1, 64], strides = [1, 1]} : vector<3x64xf32> to vector<1x64xf32>
    %30 = vector.broadcast %28 : vector<12x1xf32> to vector<12x64xf32>
    %31 = vector.broadcast %29 : vector<1x64xf32> to vector<12x64xf32>
    %32 = arith.mulf %30, %31 : vector<12x64xf32>
    %33 = arith.addf %27, %32 : vector<12x64xf32>
    %34 = arith.addf %15, %33 : vector<12x64xf32>
    %c0_20 = arith.constant 0 : index
    %c0_21 = arith.constant 0 : index
    %35 = vector.load %arg11[%c0_20, %c0_21] : memref<1x64xf32, #tpu.memory_space<vmem>>, vector<1x64xf32>
    %36 = vector.broadcast %35 : vector<1x64xf32> to vector<12x64xf32>
    %37 = arith.addf %34, %36 : vector<12x64xf32>
    %c0_22 = arith.constant 0 : index
    %c0_23 = arith.constant 0 : index
    %c0_24 = arith.constant 0 : index
    %38 = vector.load %arg4[%c0_22, %c0_23, %c0_24] : memref<1x12x32xf32, #tpu.memory_space<vmem>>, vector<1x12x32xf32>
    %39 = vector.shape_cast %38 : vector<1x12x32xf32> to vector<12x32xf32>
    %c0_25 = arith.constant 0 : index
    %c0_26 = arith.constant 0 : index
    %40 = vector.load %arg10[%c0_25, %c0_26] : memref<32x64xf32, #tpu.memory_space<vmem>>, vector<32x64xf32>
    %cst_27 = arith.constant dense<0.000000e+00> : vector<12x64xf32>
    %41 = tpu.matmul %39, %40, %cst_27 {dimension_numbers = #tpu.dot_dimension_numbers<[1], [0], [0], [1], [0, 0, 1, 1], [], []>} : vector<12x32xf32>, vector<32x64xf32>, vector<12x64xf32> -> vector<12x64xf32>
    %42 = arith.addf %37, %41 : vector<12x64xf32>
    %43 = vector.extract_strided_slice %42 {offsets = [0, 0], sizes = [12, 32], strides = [1, 1]} : vector<12x64xf32> to vector<12x32xf32>
    %44 = vector.extract_strided_slice %42 {offsets = [0, 32], sizes = [12, 32], strides = [1, 1]} : vector<12x64xf32> to vector<12x32xf32>
    %cst_28 = arith.constant dense<0.000000e+00> : vector<12x32xf32>
    %45 = tpu.matmul %6, %44, %cst_28 {dimension_numbers = #tpu.dot_dimension_numbers<[1], [0], [0], [1], [0, 0, 1, 1], [], []>} : vector<12x12xf32>, vector<12x32xf32>, vector<12x32xf32> -> vector<12x32xf32>
    %46 = arith.addf %43, %45 : vector<12x32xf32>
    %cst_29 = arith.constant 0.000000e+00 : f32
    %47 = vector.broadcast %cst_29 : f32 to vector<12x32xf32>
    %48 = arith.maximumf %46, %47 : vector<12x32xf32>
    %c0_30 = arith.constant 0 : index
    %c0_31 = arith.constant 0 : index
    %49 = vector.load %arg12[%c0_30, %c0_31] : memref<32x64xf32, #tpu.memory_space<vmem>>, vector<32x64xf32>
    %cst_32 = arith.constant dense<0.000000e+00> : vector<12x64xf32>
    %50 = tpu.matmul %48, %49, %cst_32 {dimension_numbers = #tpu.dot_dimension_numbers<[1], [0], [0], [1], [0, 0, 1, 1], [], []>} : vector<12x32xf32>, vector<32x64xf32>, vector<12x64xf32> -> vector<12x64xf32>
    %c0_33 = arith.constant 0 : index
    %c0_34 = arith.constant 0 : index
    %51 = vector.load %arg13[%c0_33, %c0_34] : memref<3x64xf32, #tpu.memory_space<vmem>>, vector<3x64xf32>
    %52 = vector.extract_strided_slice %3 {offsets = [0, 0], sizes = [12, 1], strides = [1, 1]} : vector<12x3xf32> to vector<12x1xf32>
    %53 = vector.extract_strided_slice %51 {offsets = [0, 0], sizes = [1, 64], strides = [1, 1]} : vector<3x64xf32> to vector<1x64xf32>
    %54 = vector.broadcast %52 : vector<12x1xf32> to vector<12x64xf32>
    %55 = vector.broadcast %53 : vector<1x64xf32> to vector<12x64xf32>
    %56 = arith.mulf %54, %55 : vector<12x64xf32>
    %57 = vector.extract_strided_slice %3 {offsets = [0, 1], sizes = [12, 1], strides = [1, 1]} : vector<12x3xf32> to vector<12x1xf32>
    %58 = vector.extract_strided_slice %51 {offsets = [1, 0], sizes = [1, 64], strides = [1, 1]} : vector<3x64xf32> to vector<1x64xf32>
    %59 = vector.broadcast %57 : vector<12x1xf32> to vector<12x64xf32>
    %60 = vector.broadcast %58 : vector<1x64xf32> to vector<12x64xf32>
    %61 = arith.mulf %59, %60 : vector<12x64xf32>
    %62 = arith.addf %56, %61 : vector<12x64xf32>
    %63 = vector.extract_strided_slice %3 {offsets = [0, 2], sizes = [12, 1], strides = [1, 1]} : vector<12x3xf32> to vector<12x1xf32>
    %64 = vector.extract_strided_slice %51 {offsets = [2, 0], sizes = [1, 64], strides = [1, 1]} : vector<3x64xf32> to vector<1x64xf32>
    %65 = vector.broadcast %63 : vector<12x1xf32> to vector<12x64xf32>
    %66 = vector.broadcast %64 : vector<1x64xf32> to vector<12x64xf32>
    %67 = arith.mulf %65, %66 : vector<12x64xf32>
    %68 = arith.addf %62, %67 : vector<12x64xf32>
    %69 = arith.addf %50, %68 : vector<12x64xf32>
    %c0_35 = arith.constant 0 : index
    %c0_36 = arith.constant 0 : index
    %70 = vector.load %arg14[%c0_35, %c0_36] : memref<1x64xf32, #tpu.memory_space<vmem>>, vector<1x64xf32>
    %71 = vector.broadcast %70 : vector<1x64xf32> to vector<12x64xf32>
    %72 = arith.addf %69, %71 : vector<12x64xf32>
    %73 = vector.extract_strided_slice %72 {offsets = [0, 0], sizes = [12, 32], strides = [1, 1]} : vector<12x64xf32> to vector<12x32xf32>
    %74 = vector.extract_strided_slice %72 {offsets = [0, 32], sizes = [12, 32], strides = [1, 1]} : vector<12x64xf32> to vector<12x32xf32>
    %cst_37 = arith.constant dense<0.000000e+00> : vector<12x32xf32>
    %75 = tpu.matmul %6, %74, %cst_37 {dimension_numbers = #tpu.dot_dimension_numbers<[1], [0], [0], [1], [0, 0, 1, 1], [], []>} : vector<12x12xf32>, vector<12x32xf32>, vector<12x32xf32> -> vector<12x32xf32>
    %76 = arith.addf %73, %75 : vector<12x32xf32>
    %cst_38 = arith.constant 0.000000e+00 : f32
    %77 = vector.broadcast %cst_38 : f32 to vector<12x32xf32>
    %78 = arith.maximumf %76, %77 : vector<12x32xf32>
    %c0_39 = arith.constant 0 : index
    %c0_40 = arith.constant 0 : index
    %79 = vector.load %arg15[%c0_39, %c0_40] : memref<32x3xf32, #tpu.memory_space<vmem>>, vector<32x3xf32>
    %cst_41 = arith.constant dense<0.000000e+00> : vector<12x3xf32>
    %80 = tpu.matmul %78, %79, %cst_41 {dimension_numbers = #tpu.dot_dimension_numbers<[1], [0], [0], [1], [0, 0, 1, 1], [], []>} : vector<12x32xf32>, vector<32x3xf32>, vector<12x3xf32> -> vector<12x3xf32>
    %c0_42 = arith.constant 0 : index
    %c0_43 = arith.constant 0 : index
    %81 = vector.load %arg16[%c0_42, %c0_43] : memref<3x3xf32, #tpu.memory_space<vmem>>, vector<3x3xf32>
    %82 = vector.extract_strided_slice %3 {offsets = [0, 0], sizes = [12, 1], strides = [1, 1]} : vector<12x3xf32> to vector<12x1xf32>
    %83 = vector.extract_strided_slice %81 {offsets = [0, 0], sizes = [1, 3], strides = [1, 1]} : vector<3x3xf32> to vector<1x3xf32>
    %84 = vector.broadcast %82 : vector<12x1xf32> to vector<12x3xf32>
    %85 = vector.broadcast %83 : vector<1x3xf32> to vector<12x3xf32>
    %86 = arith.mulf %84, %85 : vector<12x3xf32>
    %87 = vector.extract_strided_slice %3 {offsets = [0, 1], sizes = [12, 1], strides = [1, 1]} : vector<12x3xf32> to vector<12x1xf32>
    %88 = vector.extract_strided_slice %81 {offsets = [1, 0], sizes = [1, 3], strides = [1, 1]} : vector<3x3xf32> to vector<1x3xf32>
    %89 = vector.broadcast %87 : vector<12x1xf32> to vector<12x3xf32>
    %90 = vector.broadcast %88 : vector<1x3xf32> to vector<12x3xf32>
    %91 = arith.mulf %89, %90 : vector<12x3xf32>
    %92 = arith.addf %86, %91 : vector<12x3xf32>
    %93 = vector.extract_strided_slice %3 {offsets = [0, 2], sizes = [12, 1], strides = [1, 1]} : vector<12x3xf32> to vector<12x1xf32>
    %94 = vector.extract_strided_slice %81 {offsets = [2, 0], sizes = [1, 3], strides = [1, 1]} : vector<3x3xf32> to vector<1x3xf32>
    %95 = vector.broadcast %93 : vector<12x1xf32> to vector<12x3xf32>
    %96 = vector.broadcast %94 : vector<1x3xf32> to vector<12x3xf32>
    %97 = arith.mulf %95, %96 : vector<12x3xf32>
    %98 = arith.addf %92, %97 : vector<12x3xf32>
    %99 = arith.addf %80, %98 : vector<12x3xf32>
    %c0_44 = arith.constant 0 : index
    %c0_45 = arith.constant 0 : index
    %100 = vector.load %arg17[%c0_44, %c0_45] : memref<1x3xf32, #tpu.memory_space<vmem>>, vector<1x3xf32>
    %101 = vector.broadcast %100 : vector<1x3xf32> to vector<12x3xf32>
    %102 = arith.addf %99, %101 : vector<12x3xf32>
    %103 = math.tanh %102 : vector<12x3xf32>
    %104 = arith.addf %5, %103 : vector<12x3xf32>
    %cst_46 = arith.constant 0.000000e+00 : f32
    %105 = vector.broadcast %cst_46 : f32 to vector<12x93xf32>
    %106 = tpu.concatenate %104, %78, %105 in 1 : vector<12x3xf32>, vector<12x32xf32>, vector<12x93xf32> -> vector<12x128xf32>
    %c0_47 = arith.constant 0 : index
    %c0_48 = arith.constant 0 : index
    %c0_49 = arith.constant 0 : index
    %107 = vector.load %arg18[%c0_47, %c0_48, %c0_49] : memref<1x12x128xf32, #tpu.memory_space<vmem>>, vector<1x12x128xf32>
    %108 = vector.shape_cast %107 : vector<1x12x128xf32> to vector<12x128xf32>
    %109 = vector.shape_cast %106 : vector<12x128xf32> to vector<1x12x128xf32>
    tpu.vector_store %arg18[%c0_47, %c0_48, %c0_49], %109 {strides = array<i32>} : memref<1x12x128xf32, #tpu.memory_space<vmem>>, vector<1x12x128xf32>,
    return
  }
  func.func @transform_0(%arg0: i32) -> (i32, i32, i32) {
    %c0_i32 = arith.constant 0 : i32
    %c0_i32_0 = arith.constant 0 : i32
    %c0_i32_1 = arith.constant 0 : i32
    return %arg0, %c0_i32, %c0_i32_0 : i32, i32, i32
  }
  func.func @transform_1(%arg0: i32) -> (i32, i32, i32) {
    %c0_i32 = arith.constant 0 : i32
    %c0_i32_0 = arith.constant 0 : i32
    %c0_i32_1 = arith.constant 0 : i32
    return %arg0, %c0_i32, %c0_i32_0 : i32, i32, i32
  }
  func.func @transform_2(%arg0: i32) -> (i32, i32, i32) {
    %c0_i32 = arith.constant 0 : i32
    %c0_i32_0 = arith.constant 0 : i32
    %c0_i32_1 = arith.constant 0 : i32
    return %arg0, %c0_i32, %c0_i32_0 : i32, i32, i32
  }
  func.func @transform_3(%arg0: i32) -> (i32, i32, i32) {
    %c0_i32 = arith.constant 0 : i32
    %c0_i32_0 = arith.constant 0 : i32
    %c0_i32_1 = arith.constant 0 : i32
    return %arg0, %c0_i32, %c0_i32_0 : i32, i32, i32
  }
  func.func @transform_4(%arg0: i32) -> (i32, i32) {
    %c0_i32 = arith.constant 0 : i32
    %c0_i32_0 = arith.constant 0 : i32
    %c0_i32_1 = arith.constant 0 : i32
    return %c0_i32, %c0_i32_0 : i32, i32
  }
  func.func @transform_5(%arg0: i32) -> (i32, i32) {
    %c0_i32 = arith.constant 0 : i32
    %c0_i32_0 = arith.constant 0 : i32
    %c0_i32_1 = arith.constant 0 : i32
    return %c0_i32, %c0_i32_0 : i32, i32
  }
  func.func @transform_6(%arg0: i32) -> (i32, i32) {
    %c0_i32 = arith.constant 0 : i32
    %c0_i32_0 = arith.constant 0 : i32
    %c0_i32_1 = arith.constant 0 : i32
    return %c0_i32, %c0_i32_0 : i32, i32
  }
  func.func @transform_7(%arg0: i32) -> (i32, i32) {
    %c0_i32 = arith.constant 0 : i32
    %c0_i32_0 = arith.constant 0 : i32
    %c0_i32_1 = arith.constant 0 : i32
    return %c0_i32, %c0_i32_0 : i32, i32
  }
  func.func @transform_8(%arg0: i32) -> (i32, i32) {
    %c0_i32 = arith.constant 0 : i32
    %c0_i32_0 = arith.constant 0 : i32
    %c0_i32_1 = arith.constant 0 : i32
    return %c0_i32, %c0_i32_0 : i32, i32
  }
  func.func @transform_9(%arg0: i32) -> (i32, i32) {
    %c0_i32 = arith.constant 0 : i32
    %c0_i32_0 = arith.constant 0 : i32
    %c0_i32_1 = arith.constant 0 : i32
    return %c0_i32, %c0_i32_0 : i32, i32
  }
  func.func @transform_10(%arg0: i32) -> (i32, i32) {
    %c0_i32 = arith.constant 0 : i32
    %c0_i32_0 = arith.constant 0 : i32
    %c0_i32_1 = arith.constant 0 : i32
    return %c0_i32, %c0_i32_0 : i32, i32
  }
  func.func @transform_11(%arg0: i32) -> (i32, i32) {
    %c0_i32 = arith.constant 0 : i32
    %c0_i32_0 = arith.constant 0 : i32
    %c0_i32_1 = arith.constant 0 : i32
    return %c0_i32, %c0_i32_0 : i32, i32
  }
  func.func @transform_12(%arg0: i32) -> (i32, i32) {
    %c0_i32 = arith.constant 0 : i32
    %c0_i32_0 = arith.constant 0 : i32
    %c0_i32_1 = arith.constant 0 : i32
    return %c0_i32, %c0_i32_0 : i32, i32
  }
  func.func @transform_13(%arg0: i32) -> (i32, i32) {
    %c0_i32 = arith.constant 0 : i32
    %c0_i32_0 = arith.constant 0 : i32
    %c0_i32_1 = arith.constant 0 : i32
    return %c0_i32, %c0_i32_0 : i32, i32
  }
  func.func @transform_14(%arg0: i32) -> (i32, i32) {
    %c0_i32 = arith.constant 0 : i32
    %c0_i32_0 = arith.constant 0 : i32
    %c0_i32_1 = arith.constant 0 : i32
    return %c0_i32, %c0_i32_0 : i32, i32
  }
  func.func @transform_15(%arg0: i32) -> (i32, i32) {
    %c0_i32 = arith.constant 0 : i32
    %c0_i32_0 = arith.constant 0 : i32
    %c0_i32_1 = arith.constant 0 : i32
    return %c0_i32, %c0_i32_0 : i32, i32
  }
  func.func @transform_16(%arg0: i32) -> (i32, i32) {
    %c0_i32 = arith.constant 0 : i32
    %c0_i32_0 = arith.constant 0 : i32
    %c0_i32_1 = arith.constant 0 : i32
    return %c0_i32, %c0_i32_0 : i32, i32
  }
  func.func @transform_17(%arg0: i32) -> (i32, i32, i32) {
    %c0_i32 = arith.constant 0 : i32
    %c0_i32_0 = arith.constant 0 : i32
    %c0_i32_1 = arith.constant 0 : i32
    return %arg0, %c0_i32, %c0_i32_0 : i32, i32, i32
  }
}

</mosaic_0001>

<bundles_post_ra>
// kernel: sphere_init_head_forward.4
= control target key start
LH: loop header
LB: loop body
LE: loop exit
PB: predicated region body
PF: predicated region fallthrough
CT: control target
= control target key end

     0   :  { %s734_s12 = smov 0   ;;  %s901_s0 = inlined_call_operand.vmem [shape: bf16[512,27], index: 0, kind: input, shape index: {}]   ;;  %s902_s1 = inlined_call_operand.vmem [shape: bf16[27,8], index: 1, kind: input, shape index: {}]   ;;  %s903_s2 = inlined_call_operand.vmem [shape: f32[1,8], index: 2, kind: input, shape index: {}]   ;;  %s904_s3 = inlined_call_operand.vmem [shape: f32[512,8], index: 3, kind: output, shape index: {}]  }
   0x1 LB: > { %s572_s13 = sadd.s32 4294967295, %s711_s12   ;;  %p576_p0 = scmp.ge.s32.totalorder %s711_s12, 1  ;;  %s711_s12 = sphi %s734_s12, %s13_s12  }
   0x2   : > { %p138_p1 = scmp.lt.s32.totalorder %s711_s12, 3 }
   0x4   : > { %p139_p2 = pnand %p576_p0, %p138_p1 }
   0x5   : > { %s577_s18 = sshll.u32 (!%p139_p2), %s572_s13, 5 }
   0x6   : > { %142 = sbr.rel (%p139_p2) target bundleno = 219 (0xdb), region = 32  ;;  %p163_p3 = scmp.lt.s32.totalorder (!%p139_p2), %s577_s18, 63 }
   0xb   : > { %v651_v0 = vld [vmem:[%s902_s1 + $0x8] sm:$0xf]  ;;  %v688_v1 = vld [vmem:[%s902_s1 + $0x8] sm:$0x30]  ;;  %vm355_vm0 = vcmask 1044480   ;;  %vm356_vm1 = vcmask 1045504  }
   0xc   : > { %v652_v2 = vor.u32 %v688_v1, %v651_v0  ;;  %v713_v3 = vmov 65535   ;;  %s906_s18 = smov (!%p163_p3, %s577_s18), 63  ;;  %v687_v7 = vld [vmem:[%s902_s1] sm:$0xff]  ;;  %vm306_vm2 = vcmask 220160   ;;  %vm483_vm3 = vcmask 64512  }
   0xd   : > { %v357_v4 = vsel %vm355_vm0, 4294967295, %v713_v3  ;;  %s578_s21 = sshll.u32 %s906_s18, 2  ;;  %v794_v24 = vld [vmem:[%s903_s2] ss:$0 sm:$0xff]  ;;  %s580_s27 = sshll.u32 %s906_s18, 3 }
   0xe   : > { %v358_v5 = vsel %vm356_vm1, %v357_v4, 0  ;;  %s757_s24 = scalar_lea.vmem %s901_s0, %s578_s21  ;;  %s802_s30 = scalar_lea.vmem %s904_s3, %s580_s27 }
   0xf   : > { %v360_v6 = vand.u32 %v652_v2, %v358_v5  ;;  %v671_v8 = vld [vmem:[%s757_s24] sm:$0xff]  ;;  %v672_v12 = vld [vmem:[%s757_s24 + $0x8] sm:$0xff]  ;;  %v673_v16 = vld [vmem:[%s757_s24 + $0x10] sm:$0xff] }
  0x10   : > { %v675_v9 = vld [vmem:[%s757_s24 + $0x20] sm:$0xff]  ;;  %v676_v13 = vld [vmem:[%s757_s24 + $0x28] sm:$0xff]  ;;  %v677_v17 = vld [vmem:[%s757_s24 + $0x30] sm:$0xff] }
  0x11   : > { %368 = vmatpush.bf16.msra.mxu0 %v360_v6  ;;  %689 = vmatpush.bf16.msra.mxu1 %v360_v6  ;;  %v679_v10 = vld [vmem:[%s757_s24 + $0x40] sm:$0xff]  ;;  %v680_v14 = vld [vmem:[%s757_s24 + $0x48] sm:$0xff]  ;;  %v681_v18 = vld [vmem:[%s757_s24 + $0x50] sm:$0xff] }
  0x12   : > { %690 = vmatpush.bf16.msra.mxu2 %v360_v6  ;;  %691 = vmatpush.bf16.msra.mxu3 %v360_v6  ;;  %v683_v11 = vld [vmem:[%s757_s24 + $0x60] sm:$0xff]  ;;  %v684_v15 = vld [vmem:[%s757_s24 + $0x68] sm:$0xff]  ;;  %v685_v19 = vld [vmem:[%s757_s24 + $0x70] sm:$0xff] }
  0x13   : > { %v674_v20 = vld [vmem:[%s757_s24 + $0x18] sm:$0xff] }
  0x14   : > { %v678_v21 = vld [vmem:[%s757_s24 + $0x38] sm:$0xff] }
  0x15   : > { %369 = vmatpush.bf16.msra.mxu0 %v687_v7  ;;  %692 = vmatpush.bf16.msra.mxu1 %v687_v7  ;;  %v682_v22 = vld [vmem:[%s757_s24 + $0x58] sm:$0xff] }
  0x16   : > { %693 = vmatpush.bf16.msra.mxu2 %v687_v7  ;;  %694 = vmatpush.bf16.msra.mxu3 %v687_v7  ;;  %v686_v23 = vld [vmem:[%s757_s24 + $0x78] sm:$0xff] }
  0x18   : > { %653 = vmatmul.msk.bf16.vlgmr.msra.gmra.mxu0 %vm306_vm2, %v671_v8  ;;  %657 = vmatmul.msk.bf16.vlgmr.msra.gmra.mxu1 %vm306_vm2, %v675_v9 }
  0x19   : > { %661 = vmatmul.msk.bf16.vlgmr.msra.gmra.mxu2 %vm306_vm2, %v679_v10  ;;  %665 = vmatmul.msk.bf16.vlgmr.msra.gmra.mxu3 %vm306_vm2, %v683_v11 }
  0x28   : > { %654 = vmatmul.msk.bf16.gmra.mxu0 %vm306_vm2, %v672_v12  ;;  %658 = vmatmul.msk.bf16.gmra.mxu1 %vm306_vm2, %v676_v13 }
  0x29   : > { %662 = vmatmul.msk.bf16.gmra.mxu2 %vm306_vm2, %v680_v14  ;;  %666 = vmatmul.msk.bf16.gmra.mxu3 %vm306_vm2, %v684_v15 }
  0x38   : > { %655 = vmatmul.msk.bf16.gmra.mxu0 %vm306_vm2, %v673_v16  ;;  %659 = vmatmul.msk.bf16.gmra.mxu1 %vm306_vm2, %v677_v17 }
  0x39   : > { %663 = vmatmul.msk.bf16.gmra.mxu2 %vm306_vm2, %v681_v18  ;;  %667 = vmatmul.msk.bf16.gmra.mxu3 %vm306_vm2, %v685_v19 }
  0x48   : > { %656 = vmatmul.msk.bf16.gmra.mxu0 %vm306_vm2, %v674_v20  ;;  %660 = vmatmul.msk.bf16.gmra.mxu1 %vm306_vm2, %v678_v21 }
  0x49   : > { %664 = vmatmul.msk.bf16.gmra.mxu2 %vm306_vm2, %v682_v22  ;;  %668 = vmatmul.msk.bf16.gmra.mxu3 %vm306_vm2, %v686_v23 }
  0x95   : > { %v371_v25 = vpop.f32.mrf.mxu0  ;;  %v391_v26 = vpop.f32.mrf.mxu1 }
  0x96   : > { %v372_v27 = vadd.f32 %v794_v24, %v371_v25  ;;  %v392_v28 = vadd.f32 %v794_v24, %v391_v26 }
  0x98   : > { %v451_v29 = vmax.f32 %v372_v27, 0.0  ;;  %v459_v30 = vmax.f32 %v392_v28, 0.0 }
  0x9a   : > { %484 = vst.msk [vmem:[%s802_s30] sm:$0xff] %vm483_vm3, %v451_v29 }
  0x9b   : > { %492 = vst.msk [vmem:[%s802_s30 + $0x40] sm:$0xff] %vm483_vm3, %v459_v30 }
  0x9c   : > { %v411_v31 = vpop.f32.mrf.mxu2  ;;  %v431_v32 = vpop.f32.mrf.mxu3 }
  0x9d   : > { %v412_v33 = vadd.f32 %v794_v24, %v411_v31  ;;  %v432_v34 = vadd.f32 %v794_v24, %v431_v32  ;;  %v373_v35 = vpop.f32.mrf.mxu0  ;;  %v393_v36 = vpop.f32.mrf.mxu1 }
  0x9e   : > { %v374_v37 = vadd.f32 %v794_v24, %v373_v35  ;;  %v394_v38 = vadd.f32 %v794_v24, %v393_v36 }
  0x9f   : > { %v467_v39 = vmax.f32 %v412_v33, 0.0  ;;  %v475_v40 = vmax.f32 %v432_v34, 0.0 }
  0xa0   : > { %v452_v41 = vmax.f32 %v374_v37, 0.0  ;;  %v460_v42 = vmax.f32 %v394_v38, 0.0 }
  0xa1   : > { %500 = vst.msk [vmem:[%s802_s30 + $0x80] sm:$0xff] %vm483_vm3, %v467_v39 }
  0xa2   : > { %508 = vst.msk [vmem:[%s802_s30 + $0xc0] sm:$0xff] %vm483_vm3, %v475_v40 }
  0xa3   : > { %485 = vst.msk [vmem:[%s802_s30 + $0x8] sm:$0xff] %vm483_vm3, %v452_v41 }
  0xa4   : > { %493 = vst.msk [vmem:[%s802_s30 + $0x48] sm:$0xff] %vm483_vm3, %v460_v42  ;;  %v413_v43 = vpop.f32.mrf.mxu2  ;;  %v433_v44 = vpop.f32.mrf.mxu3 }
  0xa5   : > { %v414_v45 = vadd.f32 %v794_v24, %v413_v43  ;;  %v434_v46 = vadd.f32 %v794_v24, %v433_v44  ;;  %v376_v47 = vpop.f32.mrf.mxu0  ;;  %v396_v48 = vpop.f32.mrf.mxu1 }
  0xa6   : > { %v377_v49 = vadd.f32 %v794_v24, %v376_v47  ;;  %v397_v50 = vadd.f32 %v794_v24, %v396_v48 }
  0xa7   : > { %v468_v51 = vmax.f32 %v414_v45, 0.0  ;;  %v476_v52 = vmax.f32 %v434_v46, 0.0 }
  0xa8   : > { %v453_v53 = vmax.f32 %v377_v49, 0.0  ;;  %v461_v54 = vmax.f32 %v397_v50, 0.0 }
  0xa9   : > { %501 = vst.msk [vmem:[%s802_s30 + $0x88] sm:$0xff] %vm483_vm3, %v468_v51 }
  0xaa   : > { %509 = vst.msk [vmem:[%s802_s30 + $0xc8] sm:$0xff] %vm483_vm3, %v476_v52 }
  0xab   : > { %486 = vst.msk [vmem:[%s802_s30 + $0x10] sm:$0xff] %vm483_vm3, %v453_v53 }
  0xac   : > { %494 = vst.msk [vmem:[%s802_s30 + $0x50] sm:$0xff] %vm483_vm3, %v461_v54  ;;  %v416_v55 = vpop.f32.mrf.mxu2  ;;  %v436_v56 = vpop.f32.mrf.mxu3 }
  0xad   : > { %v417_v57 = vadd.f32 %v794_v24, %v416_v55  ;;  %v437_v58 = vadd.f32 %v794_v24, %v436_v56  ;;  %v378_v59 = vpop.f32.mrf.mxu0  ;;  %v398_v60 = vpop.f32.mrf.mxu1 }
  0xae   : > { %v379_v61 = vadd.f32 %v794_v24, %v378_v59  ;;  %v399_v62 = vadd.f32 %v794_v24, %v398_v60 }
  0xaf   : > { %v469_v63 = vmax.f32 %v417_v57, 0.0  ;;  %v477_v0 = vmax.f32 %v437_v58, 0.0 }
  0xb0   : > { %v454_v1 = vmax.f32 %v379_v61, 0.0  ;;  %v462_v2 = vmax.f32 %v399_v62, 0.0 }
  0xb1   : > { %502 = vst.msk [vmem:[%s802_s30 + $0x90] sm:$0xff] %vm483_vm3, %v469_v63 }
  0xb2   : > { %510 = vst.msk [vmem:[%s802_s30 + $0xd0] sm:$0xff] %vm483_vm3, %v477_v0 }
  0xb3   : > { %487 = vst.msk [vmem:[%s802_s30 + $0x18] sm:$0xff] %vm483_vm3, %v454_v1 }
  0xb4   : > { %495 = vst.msk [vmem:[%s802_s30 + $0x58] sm:$0xff] %vm483_vm3, %v462_v2  ;;  %v418_v3 = vpop.f32.mrf.mxu2  ;;  %v438_v4 = vpop.f32.mrf.mxu3 }
  0xb5   : > { %v419_v5 = vadd.f32 %v794_v24, %v418_v3  ;;  %v439_v6 = vadd.f32 %v794_v24, %v438_v4  ;;  %v381_v7 = vpop.f32.mrf.mxu0  ;;  %v401_v8 = vpop.f32.mrf.mxu1 }
  0xb6   : > { %v382_v9 = vadd.f32 %v794_v24, %v381_v7  ;;  %v402_v10 = vadd.f32 %v794_v24, %v401_v8 }
  0xb7   : > { %v470_v11 = vmax.f32 %v419_v5, 0.0  ;;  %v478_v12 = vmax.f32 %v439_v6, 0.0 }
  0xb8   : > { %v455_v13 = vmax.f32 %v382_v9, 0.0  ;;  %v463_v14 = vmax.f32 %v402_v10, 0.0 }
  0xb9   : > { %503 = vst.msk [vmem:[%s802_s30 + $0x98] sm:$0xff] %vm483_vm3, %v470_v11 }
  0xba   : > { %511 = vst.msk [vmem:[%s802_s30 + $0xd8] sm:$0xff] %vm483_vm3, %v478_v12 }
  0xbb   : > { %488 = vst.msk [vmem:[%s802_s30 + $0x20] sm:$0xff] %vm483_vm3, %v455_v13 }
  0xbc   : > { %496 = vst.msk [vmem:[%s802_s30 + $0x60] sm:$0xff] %vm483_vm3, %v463_v14  ;;  %v421_v15 = vpop.f32.mrf.mxu2  ;;  %v441_v16 = vpop.f32.mrf.mxu3 }
  0xbd   : > { %v422_v17 = vadd.f32 %v794_v24, %v421_v15  ;;  %v442_v18 = vadd.f32 %v794_v24, %v441_v16  ;;  %v383_v19 = vpop.f32.mrf.mxu0  ;;  %v403_v20 = vpop.f32.mrf.mxu1 }
  0xbe   : > { %v384_v21 = vadd.f32 %v794_v24, %v383_v19  ;;  %v404_v22 = vadd.f32 %v794_v24, %v403_v20 }
  0xbf   : > { %v471_v23 = vmax.f32 %v422_v17, 0.0  ;;  %v479_v25 = vmax.f32 %v442_v18, 0.0 }
  0xc0   : > { %v456_v26 = vmax.f32 %v384_v21, 0.0  ;;  %v464_v27 = vmax.f32 %v404_v22, 0.0 }
  0xc1   : > { %504 = vst.msk [vmem:[%s802_s30 + $0xa0] sm:$0xff] %vm483_vm3, %v471_v23 }
  0xc2   : > { %512 = vst.msk [vmem:[%s802_s30 + $0xe0] sm:$0xff] %vm483_vm3, %v479_v25 }
  0xc3   : > { %489 = vst.msk [vmem:[%s802_s30 + $0x28] sm:$0xff] %vm483_vm3, %v456_v26 }
  0xc4   : > { %497 = vst.msk [vmem:[%s802_s30 + $0x68] sm:$0xff] %vm483_vm3, %v464_v27  ;;  %v423_v28 = vpop.f32.mrf.mxu2  ;;  %v443_v29 = vpop.f32.mrf.mxu3 }
  0xc5   : > { %v424_v30 = vadd.f32 %v794_v24, %v423_v28  ;;  %v444_v31 = vadd.f32 %v794_v24, %v443_v29  ;;  %v386_v32 = vpop.f32.mrf.mxu0  ;;  %v406_v33 = vpop.f32.mrf.mxu1 }
  0xc6   : > { %v387_v34 = vadd.f32 %v794_v24, %v386_v32  ;;  %v407_v35 = vadd.f32 %v794_v24, %v406_v33 }
  0xc7   : > { %v472_v36 = vmax.f32 %v424_v30, 0.0  ;;  %v480_v37 = vmax.f32 %v444_v31, 0.0 }
  0xc8   : > { %v457_v38 = vmax.f32 %v387_v34, 0.0  ;;  %v465_v39 = vmax.f32 %v407_v35, 0.0 }
  0xc9   : > { %505 = vst.msk [vmem:[%s802_s30 + $0xa8] sm:$0xff] %vm483_vm3, %v472_v36 }
  0xca   : > { %513 = vst.msk [vmem:[%s802_s30 + $0xe8] sm:$0xff] %vm483_vm3, %v480_v37 }
  0xcb   : > { %490 = vst.msk [vmem:[%s802_s30 + $0x30] sm:$0xff] %vm483_vm3, %v457_v38 }
  0xcc   : > { %498 = vst.msk [vmem:[%s802_s30 + $0x70] sm:$0xff] %vm483_vm3, %v465_v39  ;;  %v426_v40 = vpop.f32.mrf.mxu2  ;;  %v446_v41 = vpop.f32.mrf.mxu3 }
  0xcd   : > { %v427_v42 = vadd.f32 %v794_v24, %v426_v40  ;;  %v447_v43 = vadd.f32 %v794_v24, %v446_v41  ;;  %v388_v44 = vpop.f32.mrf.mxu0  ;;  %v408_v45 = vpop.f32.mrf.mxu1 }
  0xce   : > { %v389_v46 = vadd.f32 %v794_v24, %v388_v44  ;;  %v409_v47 = vadd.f32 %v794_v24, %v408_v45 }
  0xcf   : > { %v473_v48 = vmax.f32 %v427_v42, 0.0  ;;  %v481_v49 = vmax.f32 %v447_v43, 0.0 }
  0xd0   : > { %v458_v50 = vmax.f32 %v389_v46, 0.0  ;;  %v466_v51 = vmax.f32 %v409_v47, 0.0 }
  0xd1   : > { %506 = vst.msk [vmem:[%s802_s30 + $0xb0] sm:$0xff] %vm483_vm3, %v473_v48 }
  0xd2   : > { %514 = vst.msk [vmem:[%s802_s30 + $0xf0] sm:$0xff] %vm483_vm3, %v481_v49 }
  0xd3   : > { %491 = vst.msk [vmem:[%s802_s30 + $0x38] sm:$0xff] %vm483_vm3, %v458_v50 }
  0xd4   : > { %499 = vst.msk [vmem:[%s802_s30 + $0x78] sm:$0xff] %vm483_vm3, %v466_v51  ;;  %v428_v52 = vpop.f32.mrf.mxu2  ;;  %v448_v53 = vpop.f32.mrf.mxu3 }
  0xd5   : > { %v429_v54 = vadd.f32 %v794_v24, %v428_v52  ;;  %v449_v55 = vadd.f32 %v794_v24, %v448_v53 }
  0xd7   : > { %v474_v56 = vmax.f32 %v429_v54, 0.0  ;;  %v482_v57 = vmax.f32 %v449_v55, 0.0 }
  0xd9   : > { %507 = vst.msk [vmem:[%s802_s30 + $0xb8] sm:$0xff] %vm483_vm3, %v474_v56 }
  0xda   : > { %515 = vst.msk [vmem:[%s802_s30 + $0xf8] sm:$0xff] %vm483_vm3, %v482_v57 }
  0xdb PF: > { %s13_s12 = sadd.s32 1, %s711_s12  }
  0xdc   : > { %p10_p4 = scmp.ge.s32.totalorder %s13_s12, 4  }
  0xde   :  { %12 = sbr.rel (!%p10_p4) target bundleno = 1 (0x1), region = 62 }

// kernel: sphere_init_head_forward.5
= control target key start
LH: loop header
LB: loop body
LE: loop exit
PB: predicated region body
PF: predicated region fallthrough
CT: control target
= control target key end

     0   :  { %s469_s12 = smov 0   ;;  %s516_s0 = inlined_call_operand.vmem [shape: bf16[128,72], index: 0, kind: input, shape index: {}]   ;;  %s517_s1 = inlined_call_operand.vmem [shape: bf16[72,16], index: 1, kind: input, shape index: {}]   ;;  %s518_s2 = inlined_call_operand.vmem [shape: f32[1,16], index: 2, kind: input, shape index: {}]   ;;  %s519_s3 = inlined_call_operand.vmem [shape: f32[128,16], index: 3, kind: output, shape index: {}]  }
   0x1 LB: > { %s362_s13 = sadd.s32 4294967295, %s447_s12   ;;  %p366_p0 = scmp.ge.s32.totalorder %s447_s12, 1  ;;  %s447_s12 = sphi %s469_s12, %s13_s12  }
   0x2   : > { %p138_p1 = scmp.lt.s32.totalorder %s447_s12, 3 }
   0x4   : > { %p139_p2 = pnand %p366_p0, %p138_p1 }
   0x5   : > { %s367_s16 = sshll.u32 (!%p139_p2), %s362_s13, 3 }
   0x6   : > { %142 = sbr.rel (%p139_p2) target bundleno = 183 (0xb7), region = 32  ;;  %p163_p3 = scmp.lt.s32.totalorder (!%p139_p2), %s367_s16, 15 }
   0xb   : > { %v191_v0 = vld [vmem:[%s517_s1 + $0x20] sm:$0xf]  ;;  %vm256_vm0 = vcmask 1043456   ;;  %v416_v4 = vld [vmem:[%s517_s1 + $0x18] sm:$0xff]  ;;  %v415_v5 = vld [vmem:[%s517_s1 + $0x10] sm:$0xff]  ;;  %s521_s16 = smov (!%p163_p3, %s367_s16), 15 }
   0xc   : > { %v233_v1 = vunpack.c.l.b16 %v191_v0  ;;  %v414_v6 = vld [vmem:[%s517_s1 + $0x8] sm:$0xff]  ;;  %s368_s23 = sshll.u32 %s521_s16, 2  ;;  %v413_v7 = vld [vmem:[%s517_s1] sm:$0xff]  ;;  %vm243_vm1 = vcmask 588800   ;;  %s370_s4 = sshll.u32 %s521_s16, 3  ;;  %vm297_vm2 = vcmask 130048  }
   0xd   : > { %s166_s28 = scalar_lea.vmem %s516_s0, %s368_s23  ;;  %v440_v12 = vld [vmem:[%s518_s2] ss:$0 sm:$0xff]  ;;  %s172_s7 = scalar_lea.vmem %s519_s3, %s370_s4 }
   0xe   : > { %v238_v2 = vpack.c.b16 %v233_v1, %v233_v1  ;;  %v409_v8 = vld [vmem:[%s166_s28] sm:$0xff]  ;;  %v410_v9 = vld [vmem:[%s166_s28 + $0x8] sm:$0xff]  ;;  %v411_v10 = vld [vmem:[%s166_s28 + $0x10] sm:$0xff] }
   0xf   : > { %v412_v11 = vld [vmem:[%s166_s28 + $0x18] sm:$0xff] }
  0x10   : > { %v258_v3 = vsel %vm256_vm0, %v238_v2, 0 }
  0x11   : > { %263 = vmatpush.bf16.msra.mxu0 %v258_v3  ;;  %417 = vmatpush.bf16.msra.mxu1 %v258_v3 }
  0x12   : > { %418 = vmatpush.bf16.msra.mxu2 %v258_v3  ;;  %419 = vmatpush.bf16.msra.mxu3 %v258_v3 }
  0x15   : > { %264 = vmatpush.bf16.msra.mxu0 %v416_v4  ;;  %420 = vmatpush.bf16.msra.mxu1 %v416_v4 }
  0x16   : > { %421 = vmatpush.bf16.msra.mxu2 %v416_v4  ;;  %422 = vmatpush.bf16.msra.mxu3 %v416_v4 }
  0x19   : > { %265 = vmatpush.bf16.msra.mxu0 %v415_v5  ;;  %423 = vmatpush.bf16.msra.mxu1 %v415_v5 }
  0x1a   : > { %424 = vmatpush.bf16.msra.mxu2 %v415_v5  ;;  %425 = vmatpush.bf16.msra.mxu3 %v415_v5 }
  0x1d   : > { %266 = vmatpush.bf16.msra.mxu0 %v414_v6  ;;  %426 = vmatpush.bf16.msra.mxu1 %v414_v6 }
  0x1e   : > { %427 = vmatpush.bf16.msra.mxu2 %v414_v6  ;;  %428 = vmatpush.bf16.msra.mxu3 %v414_v6 }
  0x21   : > { %267 = vmatpush.bf16.msra.mxu0 %v413_v7  ;;  %429 = vmatpush.bf16.msra.mxu1 %v413_v7 }
  0x22   : > { %430 = vmatpush.bf16.msra.mxu2 %v413_v7  ;;  %431 = vmatpush.bf16.msra.mxu3 %v413_v7 }
  0x24   : > { %403 = vmatmul.msk.bf16.vlgmr.msra.gmra.mxu0 %vm243_vm1, %v409_v8  ;;  %404 = vmatmul.msk.bf16.vlgmr.msra.gmra.mxu1 %vm243_vm1, %v410_v9 }
  0x25   : > { %405 = vmatmul.msk.bf16.vlgmr.msra.gmra.mxu2 %vm243_vm1, %v411_v10  ;;  %406 = vmatmul.msk.bf16.vlgmr.msra.gmra.mxu3 %vm243_vm1, %v412_v11 }
  0xa1   : > { %v269_v13 = vpop.f32.mrf.mxu0  ;;  %v274_v14 = vpop.f32.mrf.mxu1 }
  0xa2   : > { %v270_v15 = vadd.f32 %v440_v12, %v269_v13  ;;  %v275_v16 = vadd.f32 %v440_v12, %v274_v14 }
  0xa4   : > { %v289_v17 = vmax.f32 %v270_v15, 0.0  ;;  %v291_v18 = vmax.f32 %v275_v16, 0.0 }
  0xa6   : > { %298 = vst.msk [vmem:[%s172_s7] sm:$0xff] %vm297_vm2, %v289_v17 }
  0xa7   : > { %300 = vst.msk [vmem:[%s172_s7 + $0x10] sm:$0xff] %vm297_vm2, %v291_v18 }
  0xa8   : > { %v279_v19 = vpop.f32.mrf.mxu2  ;;  %v284_v20 = vpop.f32.mrf.mxu3 }
  0xa9   : > { %v280_v21 = vadd.f32 %v440_v12, %v279_v19  ;;  %v285_v22 = vadd.f32 %v440_v12, %v284_v20  ;;  %v271_v23 = vpop.f32.mrf.mxu0  ;;  %v276_v24 = vpop.f32.mrf.mxu1 }
  0xaa   : > { %v272_v25 = vadd.f32 %v440_v12, %v271_v23  ;;  %v277_v26 = vadd.f32 %v440_v12, %v276_v24 }
  0xab   : > { %v293_v27 = vmax.f32 %v280_v21, 0.0  ;;  %v295_v28 = vmax.f32 %v285_v22, 0.0 }
  0xac   : > { %v290_v29 = vmax.f32 %v272_v25, 0.0  ;;  %v292_v30 = vmax.f32 %v277_v26, 0.0 }
  0xad   : > { %302 = vst.msk [vmem:[%s172_s7 + $0x20] sm:$0xff] %vm297_vm2, %v293_v27 }
  0xae   : > { %304 = vst.msk [vmem:[%s172_s7 + $0x30] sm:$0xff] %vm297_vm2, %v295_v28 }
  0xaf   : > { %299 = vst.msk [vmem:[%s172_s7 + $0x8] sm:$0xff] %vm297_vm2, %v290_v29 }
  0xb0   : > { %301 = vst.msk [vmem:[%s172_s7 + $0x18] sm:$0xff] %vm297_vm2, %v292_v30  ;;  %v281_v31 = vpop.f32.mrf.mxu2  ;;  %v286_v32 = vpop.f32.mrf.mxu3 }
  0xb1   : > { %v282_v33 = vadd.f32 %v440_v12, %v281_v31  ;;  %v287_v34 = vadd.f32 %v440_v12, %v286_v32 }
  0xb3   : > { %v294_v35 = vmax.f32 %v282_v33, 0.0  ;;  %v296_v36 = vmax.f32 %v287_v34, 0.0 }
  0xb5   : > { %303 = vst.msk [vmem:[%s172_s7 + $0x28] sm:$0xff] %vm297_vm2, %v294_v35 }
  0xb6   : > { %305 = vst.msk [vmem:[%s172_s7 + $0x38] sm:$0xff] %vm297_vm2, %v296_v36 }
  0xb7 PF: > { %s13_s12 = sadd.s32 1, %s447_s12  }
  0xb8   : > { %p10_p4 = scmp.ge.s32.totalorder %s13_s12, 4  }
  0xba   :  { %12 = sbr.rel (!%p10_p4) target bundleno = 1 (0x1), region = 62 }

// kernel: sphere_init_head_forward.6
= control target key start
LH: loop header
LB: loop body
LE: loop exit
PB: predicated region body
PF: predicated region fallthrough
CT: control target
= control target key end

     0   :  { %s1103_s18 = smov 0   ;;  %s1251_s0 = inlined_call_operand.vmem [shape: f32[2,12,24], index: 0, kind: input, shape index: {}]   ;;  %s1252_s1 = inlined_call_operand.vmem [shape: f32[2,12,3], index: 1, kind: input, shape index: {}]   ;;  %s1253_s2 = inlined_call_operand.vmem [shape: f32[2,12,3], index: 2, kind: input, shape index: {}]   ;;  %s1254_s3 = inlined_call_operand.vmem [shape: f32[12,12], index: 3, kind: input, shape index: {}]   ;;  %s1255_s4 = inlined_call_operand.vmem [shape: f32[24,32], index: 4, kind: input, shape index: {}]   ;;  %s1256_s5 = inlined_call_operand.vmem [shape: f32[1,32], index: 5, kind: input, shape index: {}]   ;;  %s1257_s6 = inlined_call_operand.vmem [shape: f32[32,64], index: 6, kind: input, shape index: {}]   ;;  %s1258_s7 = inlined_call_operand.vmem [shape: f32[3,64], index: 7, kind: input, shape index: {}]   ;;  %s1259_s8 = inlined_call_operand.vmem [shape: f32[1,64], index: 8, kind: input, shape index: {}]   ;;  %s1260_s9 = inlined_call_operand.vmem [shape: f32[32,64], index: 9, kind: input, shape index: {}]   ;;  %s1261_s10 = inlined_call_operand.vmem [shape: f32[3,64], index: 10, kind: input, shape index: {}]   ;;  %s1262_s11 = inlined_call_operand.vmem [shape: f32[1,64], index: 11, kind: input, shape index: {}]   ;;  %s1263_s12 = inlined_call_operand.vmem [shape: f32[32,3], index: 12, kind: input, shape index: {}]   ;;  %s1264_s13 = inlined_call_operand.vmem [shape: f32[3,3], index: 13, kind: input, shape index: {}]   ;;  %s1265_s14 = inlined_call_operand.vmem [shape: f32[1,3], index: 14, kind: input, shape index: {}]   ;;  %s1266_s15 = inlined_call_operand.vmem [shape: f32[2,12,128], index: 15, kind: output, shape index: {}]  }
   0x1 LB: > { %s945_s19 = sadd.s32 4294967295, %s1016_s18   ;;  %p949_p0 = scmp.ge.s32.totalorder %s1016_s18, 1  ;;  %s1016_s18 = sphi %s1103_s18, %s25_s18  }
   0x2   : > { %p457_p1 = scmp.lt.s32.totalorder %s1016_s18, 3 }
   0x4   : > { %p458_p2 = pnand %p949_p0, %p457_p1 }
   0x5   : > { %p515_p3 = scmp.lt.s32.totalorder (!%p458_p2), %s945_s19, 1  ;;  %s1021_s21 = smov (!%p458_p2), 96  }
   0x6   : > { %461 = sbr.rel (%p458_p2) target bundleno = 1087 (0x43f), region = 80  ;;  %s1022_s20 = smov (!%p458_p2), 3  }
   0xb   : > { %v545_v0 = vld [vmem:[%s1255_s4 + $0x10] sm:$0xff]  ;;  %v544_v1 = vld [vmem:[%s1255_s4 + $0x8] sm:$0xff]  ;;  %v543_v2 = vld [vmem:[%s1255_s4] sm:$0xff]  ;;  %s1268_s19 = smov (!%p515_p3, %s945_s19), 1  ;;  %v1018_v3 = vmov 0   ;;  %vm550_vm0 = vcmask 195584  }
   0xc   : > { %570 = vmatpush.msra.mxu0 %v545_v0  ;;  %978 = vmatpush.msra.mxu1 %v545_v0  ;;  %v585_v4 = vld [vmem:[%s1257_s6 + $0x18] sm:$0xff]  ;;  %s1123_s28 = sshll.u32 %s1268_s19, 4  ;;  %v584_v5 = vld [vmem:[%s1257_s6 + $0x10] sm:$0xff]  ;;  %v583_v10 = vld [vmem:[%s1257_s6 + $0x8] sm:$0xff]  ;;  %v1019_v12 = vmov 1   ;;  %v1020_v13 = vmov 2  }
   0xd   : > { %996 = vset.pattern.permute.xlu0 %v1018_v3  ;;  %998 = vset.pattern.permute.xlu1 %v1018_v3  ;;  %s519_s16 = scalar_lea.vmem %s1251_s0, %s1123_s28  ;;  %s524_s19 = scalar_lea.vmem %s1252_s1, %s1123_s28  ;;  %v582_v11 = vld [vmem:[%s1257_s6] sm:$0xff]  ;;  %vm626_vm1 = vcmask 261120   ;;  %vm676_vm2 = vcmask 1043456   ;;  %vm669_vm3 = vcmask 97280   ;;  %v542_v50 = vld [vmem:[%s1254_s3 + $0x8] sm:$0xf] }
   0xe   : > { %571 = vmatpush.msra.mxu0 %v544_v1  ;;  %979 = vmatpush.msra.mxu1 %v544_v1  ;;  %v535_v6 = vld [vmem:[%s519_s16] sm:$0xff]  ;;  %v536_v7 = vld [vmem:[%s519_s16 + $0x8] sm:$0xf]  ;;  %v709_v52 = vld [vmem:[%s1260_s9 + $0x18] sm:$0xff]  ;;  %s529_s27 = scalar_lea.vmem %s1253_s2, %s1123_s28  ;;  %vm858_vm4 = vcmask 23552   ;;  %vm861_vm5 = vcmask 285696   ;;  %s534_s30 = scalar_lea.vmem %s1266_s15, %s1123_s28 }
   0xf   : > { %v538_v8 = vld [vmem:[%s524_s19 + $0x8] sm:$0xf]  ;;  %v537_v9 = vld [vmem:[%s524_s19] sm:$0xff]  ;;  %1000 = vset.pattern.permute.xlu2 %v1020_v13  ;;  %v708_v53 = vld [vmem:[%s1260_s9 + $0x10] sm:$0xff] }
  0x10   : > { %572 = vmatpush.msra.mxu0 %v543_v2  ;;  %980 = vmatpush.msra.mxu1 %v543_v2  ;;  %v1002_v14 = vld [vmem:[%s1256_s5] ss:$0 sm:$0xff]  ;;  %v707_v54 = vld [vmem:[%s1260_s9 + $0x8] sm:$0xff] }
  0x11   : > { %958 = vmatmul.msk.f32.vlgmr.msra.gmra.mxu0 %vm550_vm0, %v535_v6  ;;  %959 = vmatmul.msk.f32.vlgmr.msra.gmra.mxu1 %vm550_vm0, %v536_v7  ;;  %v586_v23 = vld [vmem:[%s1258_s7] sm:$0x7] }
  0x12   : > { %645 = vmatpush.msrb.mxu1 %v585_v4  ;;  %594 = vperm.xlu0 %996, %v538_v8   ;;  %v597_v24 = vperm.slane %v586_v23, 0  ;;  %v608_v25 = vperm.slane %v586_v23, 1  ;;  %v621_v29 = vperm.slane %v586_v23, 2  ;;  %v1003_v38 = vld [vmem:[%s1259_s8] ss:$0 sm:$0xff] }
  0x13   : > { %589 = vperm.xlu1 %998, %v537_v9   ;;  %618 = vperm.xlu2 %1000, %v538_v8   ;;  %v541_v49 = vld [vmem:[%s1254_s3] sm:$0xff] }
  0x14   : > { %646 = vmatpush.msrb.mxu1 %v584_v5  ;;  %v706_v55 = vld [vmem:[%s1260_s9] sm:$0xff] }
  0x15   : > { %v710_v62 = vld [vmem:[%s1261_s10] sm:$0x7] }
  0x16   : > { %647 = vmatpush.msrb.mxu1 %v583_v10  ;;  %v711_v63 = vperm.slane %v710_v62, 0  ;;  %v714_v0 = vperm.slane %v710_v62, 1  ;;  %v719_v3 = vperm.slane %v710_v62, 2 }
  0x18   : > { %648 = vmatpush.msrb.mxu1 %v582_v11 }
  0x1a   : > { %997 = vset.pattern.permute.xlu0 %v1019_v12 }
  0x1b   : > { %605 = vperm.xlu0 %997, %v538_v8   ;;  %999 = vset.pattern.permute.xlu1 %v1019_v12 }
  0x1c   : > { %601 = vperm.xlu1 %999, %v537_v9   ;;  %614 = vperm.xlu2 %1000, %v537_v9   ;;  %v1004_v9 = vld [vmem:[%s1262_s11] ss:$0 sm:$0xff] }
  0x23   : > { %1001 = vset.pattern.permute.xlu0 %v1020_v13 }
  0x6d   : > { %v1149_v22 = vpop.permute.xlu2 %618 }
  0x6e   : > { %v623_v41 = vmul.f32 %v621_v29, %v1149_v22  ;;  %v721_v12 = vmul.f32 %v719_v3, %v1149_v22 }
  0x76   : > { %v1160_v31 = vpop.permute.xlu2 %614 }
  0x77   : > { %v622_v32 = vmul.f32 %v621_v29, %v1160_v31  ;;  %v720_v4 = vmul.f32 %v719_v3, %v1160_v31 }
  0x84   : > { %v1154_v26 = vpop.permute.xlu0 %594 }
  0x85   : > { %v1147_v21 = vpop.permute.xlu1 %589  ;;  %v599_v36 = vmul.f32 %v597_v24, %v1154_v26  ;;  %v713_v6 = vmul.f32 %v711_v63, %v1154_v26 }
  0x86   : > { %v598_v28 = vmul.f32 %v597_v24, %v1147_v21  ;;  %v712_v1 = vmul.f32 %v711_v63, %v1147_v21  ;;  %v797_v24 = vld [vmem:[%s1263_s12 + $0x10] sm:$0xff] }
  0x8d   : > { %v1163_v34 = vpop.permute.xlu0 %605 }
  0x8e   : > { %v574_v15 = vpop.f32.mrf.mxu0  ;;  %v577_v17 = vpop.f32.mrf.mxu1  ;;  %v610_v37 = vmul.f32 %v608_v25, %v1163_v34  ;;  %v716_v7 = vmul.f32 %v714_v0, %v1163_v34 }
  0x8f   : > { %v575_v16 = vadd.f32 %v1002_v14, %v574_v15  ;;  %v578_v19 = vadd.f32 %v1002_v14, %v577_v17  ;;  %v1156_v27 = vpop.permute.xlu1 %601 }
  0x90   : > { %v609_v30 = vmul.f32 %v608_v25, %v1156_v27  ;;  %v612_v43 = vadd.f32 %v610_v37, %v599_v36  ;;  %v715_v2 = vmul.f32 %v714_v0, %v1156_v27  ;;  %v718_v14 = vadd.f32 %v716_v7, %v713_v6  ;;  %v796_v25 = vld [vmem:[%s1263_s12 + $0x8] sm:$0xff]  ;;  %v799_v37 = vld [vmem:[%s1264_s13] sm:$0x7] }
  0x91   : > { %v580_v18 = vmax.f32 %v575_v16, 0.0  ;;  %v581_v20 = vmax.f32 %v578_v19, 0.0  ;;  %v798_v19 = vld [vmem:[%s1263_s12 + $0x18] sm:$0xff] }
  0x92   : > { %v611_v33 = vadd.f32 %v609_v30, %v598_v28  ;;  %v625_v44 = vadd.f32 %v623_v41, %v612_v43  ;;  %v717_v5 = vadd.f32 %v715_v2, %v712_v1  ;;  %v723_v15 = vadd.f32 %v721_v12, %v718_v14  ;;  %831 = vmatpush.msrb.mxu0 %v798_v19  ;;  %v795_v28 = vld [vmem:[%s1263_s12] sm:$0xff] }
  0x93   : > { %960 = vmatmul.msk.f32.vlgmr.msrb.gmra.mxu1 %vm626_vm1, %v580_v18 }
  0x94   : > { %v624_v35 = vadd.f32 %v622_v32, %v611_v33  ;;  %v722_v8 = vadd.f32 %v720_v4, %v717_v5  ;;  %832 = vmatpush.msrb.mxu0 %v797_v24 }
  0x96   : > { %833 = vmatpush.msrb.mxu0 %v796_v25 }
  0x98   : > { %834 = vmatpush.msrb.mxu0 %v795_v28 }
  0x9b   : > { %961 = vmatmul.msk.f32.gmra.mxu1 %vm626_vm1, %v581_v20 }
 0x110   : > { %v650_v39 = vpop.f32.mrf.mxu1 }
 0x111   : > { %v651_v40 = vadd.f32 %v650_v39, %v624_v35  ;;  %v803_v39 = vperm.slane %v799_v37, 1 }
 0x113   : > { %v660_v42 = vadd.f32 %v1003_v38, %v651_v40  ;;  %v804_v41 = vmul.f32 %v803_v39, %v1156_v27 }
 0x115   : > { %664 = vrot.lane.b32.xlu2 %v660_v42, %s1021_s21 }
 0x118   : > { %v653_v45 = vpop.f32.mrf.mxu1 }
 0x119   : > { %v654_v46 = vadd.f32 %v653_v45, %v625_v44 }
 0x11b   : > { %v661_v47 = vadd.f32 %v1003_v38, %v654_v46  ;;  %v800_v38 = vperm.slane %v799_v37, 0  ;;  %v805_v46 = vmul.f32 %v803_v39, %v1163_v34  ;;  %v539_v34 = vld [vmem:[%s529_s27] sm:$0xff] }
 0x11d   : > { %666 = vrot.lane.b32.xlu1 %v661_v47, %s1021_s21  ;;  %v801_v40 = vmul.f32 %v800_v38, %v1147_v21  ;;  %v802_v45 = vmul.f32 %v800_v38, %v1154_v26 }
 0x11f   : > { %v806_v44 = vadd.f32 %v804_v41, %v801_v40  ;;  %v807_v27 = vadd.f32 %v805_v46, %v802_v45 }
 0x16f   : > { %v665_v51 = vpop.permute.xlu2 %664 }
 0x18f   : > { %v667_v48 = vpop.permute.xlu1 %666 }
 0x190   : > { %962 = vmatpush.msk.msra.mxu2 %vm676_vm2, %v667_v48  ;;  %981 = vmatpush.msk.msra.mxu3 %vm676_vm2, %v667_v48  ;;  %v1005_v48 = vld [vmem:[%s1265_s14] ss:$0 sm:$0xff] }
 0x192   : > { %694 = vmatpush.msra.mxu2 %v665_v51  ;;  %982 = vmatpush.msra.mxu3 %v665_v51 }
 0x193   : > { %963 = vmatmul.msk.f32.vlgmr.msra.gmra.mxu2 %vm669_vm3, %v541_v49  ;;  %964 = vmatmul.msk.f32.vlgmr.msra.gmra.mxu3 %vm669_vm3, %v542_v50 }
 0x194   : > { %742 = vmatpush.msrb.mxu3 %v709_v52 }
 0x196   : > { %743 = vmatpush.msrb.mxu3 %v708_v53 }
 0x198   : > { %744 = vmatpush.msrb.mxu3 %v707_v54 }
 0x19a   : > { %745 = vmatpush.msrb.mxu3 %v706_v55 }
 0x216   : > { %v696_v56 = vpop.f32.mrf.mxu2  ;;  %v699_v59 = vpop.f32.mrf.mxu3 }
 0x217   : > { %v702_v57 = vadd.f32 %v696_v56, %v660_v42  ;;  %v703_v60 = vadd.f32 %v699_v59, %v661_v47  ;;  %v808_v42 = vperm.slane %v799_v37, 2 }
 0x219   : > { %v704_v58 = vmax.f32 %v702_v57, 0.0  ;;  %v705_v61 = vmax.f32 %v703_v60, 0.0  ;;  %v809_v43 = vmul.f32 %v808_v42, %v1160_v31  ;;  %v810_v21 = vmul.f32 %v808_v42, %v1149_v22 }
 0x21b   : > { %965 = vmatmul.msk.f32.vlgmr.msrb.gmra.mxu3 %vm626_vm1, %v704_v58  ;;  %v811_v47 = vadd.f32 %v809_v43, %v806_v44  ;;  %v812_v26 = vadd.f32 %v810_v21, %v807_v27  ;;  %v540_v58 = vld [vmem:[%s529_s27 + $0x8] sm:$0xf] }
 0x223   : > { %966 = vmatmul.msk.f32.gmra.mxu3 %vm626_vm1, %v705_v61 }
 0x29e   : > { %v747_v10 = vpop.f32.mrf.mxu3 }
 0x29f   : > { %v748_v11 = vadd.f32 %v747_v10, %v722_v8 }
 0x2a1   : > { %v757_v13 = vadd.f32 %v1004_v9, %v748_v11 }
 0x2a3   : > { %761 = vrot.lane.b32.xlu1 %v757_v13, %s1021_s21 }
 0x2a6   : > { %v750_v16 = vpop.f32.mrf.mxu3 }
 0x2a7   : > { %v751_v17 = vadd.f32 %v750_v16, %v723_v15 }
 0x2a9   : > { %v758_v18 = vadd.f32 %v1004_v9, %v751_v17 }
 0x2ab   : > { %763 = vrot.lane.b32.xlu0 %v758_v18, %s1021_s21 }
 0x315   : > { %v762_v23 = vpop.permute.xlu1 %761 }
 0x31d   : > { %v764_v20 = vpop.permute.xlu0 %763 }
 0x31e   : > { %967 = vmatpush.msk.msrb.mxu2 %vm676_vm2, %v764_v20 }
 0x320   : > { %783 = vmatpush.msrb.mxu2 %v762_v23 }
 0x321   : > { %968 = vmatmul.msk.f32.vlgmr.msrb.gmra.mxu2 %vm669_vm3, %v541_v49 }
 0x329   : > { %969 = vmatmul.msk.f32.gmra.mxu2 %vm669_vm3, %v542_v50 }
 0x3a4   : > { %v785_v29 = vpop.f32.mrf.mxu2 }
 0x3a5   : > { %v791_v30 = vadd.f32 %v785_v29, %v757_v13 }
 0x3a7   : > { %v793_v32 = vmax.f32 %v791_v30, 0.0 }
 0x3a9   : > { %852 = vrot.lane.b32.xlu2 %v793_v32, %s1022_s20  ;;  %970 = vmatmul.msk.f32.vlgmr.msrb.gmra.mxu0 %vm626_vm1, %v793_v32 }
 0x3ac   : > { %v788_v33 = vpop.f32.mrf.mxu2 }
 0x3ad   : > { %v792_v35 = vadd.f32 %v788_v33, %v758_v18 }
 0x3af   : > { %v794_v36 = vmax.f32 %v792_v35, 0.0 }
 0x3b1   : > { %854 = vrot.lane.b32.xlu0 %v794_v36, %s1022_s20  ;;  %971 = vmatmul.msk.f32.gmra.mxu0 %vm626_vm1, %v794_v36 }
 0x403   : > { %v853_v22 = vpop.permute.xlu2 %852 }
 0x423   : > { %v855_v61 = vpop.permute.xlu0 %854 }
 0x426   : > { %v836_v49 = vpop.f32.mrf.mxu0 }
 0x427   : > { %v837_v50 = vadd.f32 %v836_v49, %v811_v47 }
 0x429   : > { %v846_v51 = vadd.f32 %v1005_v48, %v837_v50 }
 0x42b   : > { %1006 = vtanh.f32 %v846_v51 }
 0x42e   : > { %v839_v31 = vpop.f32.mrf.mxu0 }
 0x42f   : > { %v840_v52 = vadd.f32 %v839_v31, %v812_v26 }
 0x431   : > { %v1007_v53 = vpop.eup %1006  ;;  %v847_v54 = vadd.f32 %v1005_v48, %v840_v52 }
 0x432   : > { %v850_v55 = vadd.f32 %v1007_v53, %v539_v34 }
 0x433   : > { %1008 = vtanh.f32 %v847_v54 }
 0x434   : > { %v859_v56 = vsel %vm858_vm4, %v850_v55, %v853_v22 }
 0x435   : > { %v862_v57 = vsel %vm861_vm5, %v859_v56, 0.0 }
 0x436   : > { %864 = vst [vmem:[%s534_s30] sm:$0xff] %v862_v57 }
 0x439   : > { %v1009_v59 = vpop.eup %1008 }
 0x43a   : > { %v851_v60 = vadd.f32 %v1009_v59, %v540_v58 }
 0x43c   : > { %v860_v62 = vsel %vm858_vm4, %v851_v60, %v855_v61 }
 0x43d   : > { %v863_v63 = vsel %vm861_vm5, %v860_v62, 0.0 }
 0x43e   : > { %865 = vst [vmem:[%s534_s30 + $0x8] sm:$0xf] %v863_v63 }
 0x43f PF: > { %s25_s18 = sadd.s32 1, %s1016_s18  }
 0x440   : > { %p22_p4 = scmp.ge.s32.totalorder %s25_s18, 4  }
 0x442   :  { %24 = sbr.rel (!%p22_p4) target bundleno = 1 (0x1), region = 116 }

// kernel: sphere_init_head_forward.7
= control target key start
LH: loop header
LB: loop body
LE: loop exit
PB: predicated region body
PF: predicated region fallthrough
CT: control target
= control target key end

     0   :  { %s1240_s24 = smov 0   ;;  %s1430_s0 = inlined_call_operand.vmem [shape: f32[2,12,24], index: 0, kind: input, shape index: {}]   ;;  %s1431_s1 = inlined_call_operand.vmem [shape: f32[2,12,3], index: 1, kind: input, shape index: {}]   ;;  %s1432_s2 = inlined_call_operand.vmem [shape: f32[2,12,3], index: 2, kind: input, shape index: {}]   ;;  %s1433_s3 = inlined_call_operand.vmem [shape: f32[2,12,32], index: 3, kind: input, shape index: {}]   ;;  %s1434_s4 = inlined_call_operand.vmem [shape: f32[12,12], index: 4, kind: input, shape index: {}]   ;;  %s1435_s5 = inlined_call_operand.vmem [shape: f32[24,32], index: 5, kind: input, shape index: {}]   ;;  %s1436_s6 = inlined_call_operand.vmem [shape: f32[1,32], index: 6, kind: input, shape index: {}]   ;;  %s1437_s7 = inlined_call_operand.vmem [shape: f32[32,64], index: 7, kind: input, shape index: {}]   ;;  %s1438_s8 = inlined_call_operand.vmem [shape: f32[3,64], index: 8, kind: input, shape index: {}]   ;;  %s1439_s9 = inlined_call_operand.vmem [shape: f32[32,64], index: 9, kind: input, shape index: {}]   ;;  %s1440_s10 = inlined_call_operand.vmem [shape: f32[1,64], index: 10, kind: input, shape index: {}]   ;;  %s1441_s11 = inlined_call_operand.vmem [shape: f32[32,64], index: 11, kind: input, shape index: {}]   ;;  %s1442_s12 = inlined_call_operand.vmem [shape: f32[3,64], index: 12, kind: input, shape index: {}]   ;;  %s1443_s13 = inlined_call_operand.vmem [shape: f32[1,64], index: 13, kind: input, shape index: {}]   ;;  %s1444_s14 = inlined_call_operand.vmem [shape: f32[32,3], index: 14, kind: input, shape index: {}]   ;;  %s1445_s15 = inlined_call_operand.vmem [shape: f32[3,3], index: 15, kind: input, shape index: {}]   ;;  %s1446_s16 = inlined_call_operand.vmem [shape: f32[1,3], index: 16, kind: input, shape index: {}]   ;;  %s1447_s17 = inlined_call_operand.vmem [shape: f32[2,12,128], index: 17, kind: output, shape index: {}]  }
   0x1   :  { %1448 = sst [smem:[#allocation2_spill]] %s1430_s0 }
   0x2   :  { %1449 = sst [smem:[#allocation3_spill]] %s1431_s1 }
   0x3 LB: > { %s1068_s25 = sadd.s32 4294967295, %s1143_s24   ;;  %p1072_p0 = scmp.ge.s32.totalorder %s1143_s24, 1  ;;  %s1143_s24 = sphi %s1240_s24, %s27_s24  }
   0x4   : > { %p517_p1 = scmp.lt.s32.totalorder %s1143_s24, 3 }
   0x6   : > { %p518_p2 = pnand %p1072_p0, %p517_p1 }
   0x7   : > { %p584_p3 = scmp.lt.s32.totalorder (!%p518_p2), %s1068_s25, 1  ;;  %s1450_s22 = sld [smem:[#allocation2_spill]] (!%p518_p2) }
   0x8   : > { %521 = sbr.rel (%p518_p2) target bundleno = 1103 (0x44f), region = 88  ;;  %s1451_s28 = sld [smem:[#allocation3_spill]] (!%p518_p2) }
   0xd   : > { %v619_v0 = vld [vmem:[%s1435_s5 + $0x10] sm:$0xff]  ;;  %v618_v1 = vld [vmem:[%s1435_s5 + $0x8] sm:$0xff]  ;;  %v659_v2 = vld [vmem:[%s1437_s7 + $0x18] sm:$0xff]  ;;  %v1145_v3 = vmov 0   ;;  %s1453_s25 = smov (!%p584_p3, %s1068_s25), 1  ;;  %vm624_vm0 = vcmask 195584  }
   0xe   : > { %644 = vmatpush.msra.mxu0 %v619_v0  ;;  %1125 = vset.pattern.permute.xlu1 %v1145_v3  ;;  %v617_v4 = vld [vmem:[%s1435_s5] sm:$0xff]  ;;  %s1260_s1 = sshll.u32 %s1453_s25, 4  ;;  %v658_v7 = vld [vmem:[%s1437_s7 + $0x10] sm:$0xff]  ;;  %v657_v9 = vld [vmem:[%s1437_s7 + $0x8] sm:$0xff]  ;;  %v1146_v11 = vmov 1   ;;  %v1147_v17 = vmov 2  }
   0xf   : > { %719 = vmatpush.msra.mxu1 %v659_v2  ;;  %1106 = vmatpush.msra.mxu2 %v659_v2  ;;  %s588_s23 = scalar_lea.vmem %s1450_s22, %s1260_s1  ;;  %s593_s29 = scalar_lea.vmem %s1451_s28, %s1260_s1  ;;  %v656_v10 = vld [vmem:[%s1437_s7] sm:$0xff]  ;;  %v741_v12 = vld [vmem:[%s1439_s9 + $0x18] sm:$0xff]  ;;  %v740_v14 = vld [vmem:[%s1439_s9 + $0x10] sm:$0xff]  ;;  %vm700_vm1 = vcmask 261120   ;;  %vm787_vm2 = vcmask 1043456   ;;  %vm780_vm3 = vcmask 97280  }
  0x10   : > { %645 = vmatpush.msra.mxu0 %v618_v1  ;;  %1123 = vset.pattern.permute.xlu0 %v1145_v3  ;;  %v609_v5 = vld [vmem:[%s588_s23] sm:$0xff]  ;;  %v610_v6 = vld [vmem:[%s588_s23 + $0x8] sm:$0xf]  ;;  %s603_s20 = scalar_lea.vmem %s1433_s3, %s1260_s1  ;;  %s1149_s28 = smov 3   ;;  %vm969_vm4 = vcmask 23552   ;;  %vm972_vm5 = vcmask 285696  }
  0x11   : > { %720 = vmatpush.msra.mxu1 %v658_v7  ;;  %v611_v8 = vld [vmem:[%s593_s29] sm:$0xff]  ;;  %1107 = vmatpush.msra.mxu2 %v658_v7  ;;  %v612_v13 = vld [vmem:[%s593_s29 + $0x8] sm:$0xf]  ;;  %s1148_s29 = smov 96   ;;  %s598_s19 = scalar_lea.vmem %s1432_s2, %s1260_s1 }
  0x12   : > { %646 = vmatpush.msra.mxu0 %v617_v4  ;;  %663 = vperm.xlu1 %1125, %v611_v8   ;;  %v739_v15 = vld [vmem:[%s1439_s9 + $0x8] sm:$0xff]  ;;  %v738_v16 = vld [vmem:[%s1439_s9] sm:$0xff]  ;;  %s608_s22 = scalar_lea.vmem %s1447_s17, %s1260_s1 }
  0x13   : > { %1083 = vmatmul.msk.f32.vlgmr.msra.gmra.mxu0 %vm624_vm0, %v609_v5  ;;  %721 = vmatpush.msra.mxu1 %v657_v9  ;;  %v1129_v18 = vld [vmem:[%s1436_s6] ss:$0 sm:$0xff]  ;;  %v737_v26 = vld [vmem:[%s603_s20 + $0x8] sm:$0xf] }
  0x14   : > { %1108 = vmatpush.msra.mxu2 %v657_v9  ;;  %668 = vperm.xlu0 %1123, %v612_v13   ;;  %v736_v25 = vld [vmem:[%s603_s20] sm:$0xff] }
  0x15   : > { %722 = vmatpush.msra.mxu1 %v656_v10  ;;  %1127 = vset.pattern.permute.xlu2 %v1147_v17  ;;  %v1305_v28 = vld [vmem:[%s1442_s12] sm:$0x7] }
  0x16   : > { %1109 = vmatpush.msra.mxu2 %v656_v10  ;;  %692 = vperm.xlu2 %1127, %v612_v13   ;;  %v1310_v29 = vld [vmem:[%s1445_s15] sm:$0x7]  ;;  %v822_v30 = vperm.slane %v1305_v28, 0  ;;  %v825_v32 = vperm.slane %v1305_v28, 1  ;;  %v830_v34 = vperm.slane %v1305_v28, 2  ;;  %v909_v28 = vld [vmem:[%s1444_s14 + $0x18] sm:$0xff] }
  0x17   : > { %v911_v31 = vperm.slane %v1310_v29, 0  ;;  %v914_v33 = vperm.slane %v1310_v29, 1  ;;  %v919_v35 = vperm.slane %v1310_v29, 2  ;;  %v660_v49 = vld [vmem:[%s1438_s8] sm:$0x7]  ;;  %942 = vmatpush.msrb.mxu1 %v909_v28 }
  0x18   : > { %760 = vmatpush.msrb.mxu2 %v741_v12  ;;  %v671_v50 = vperm.slane %v660_v49, 0  ;;  %v682_v51 = vperm.slane %v660_v49, 1  ;;  %v695_v54 = vperm.slane %v660_v49, 2  ;;  %v1130_v3 = vld [vmem:[%s1440_s10] ss:$0 sm:$0xff] }
  0x19   : > { %v906_v49 = vld [vmem:[%s1444_s14] sm:$0xff] }
  0x1a   : > { %1126 = vset.pattern.permute.xlu1 %v1146_v11  ;;  %761 = vmatpush.msrb.mxu2 %v740_v14 }
  0x1b   : > { %1084 = vmatmul.msk.f32.gmra.mxu0 %vm624_vm0, %v610_v6  ;;  %675 = vperm.xlu1 %1126, %v611_v8  }
  0x1c   : > { %762 = vmatpush.msrb.mxu2 %v739_v15  ;;  %1124 = vset.pattern.permute.xlu0 %v1146_v11  ;;  %v820_v15 = vld [vmem:[%s1441_s11 + $0x18] sm:$0xff] }
  0x1d   : > { %679 = vperm.xlu0 %1124, %v612_v13   ;;  %v615_v13 = vld [vmem:[%s1434_s4] sm:$0xff] }
  0x1e   : > { %763 = vmatpush.msrb.mxu2 %v738_v16  ;;  %688 = vperm.xlu2 %1127, %v611_v8   ;;  %v616_v16 = vld [vmem:[%s1434_s4 + $0x8] sm:$0xf] }
  0x25   : > { %1128 = vset.pattern.permute.xlu0 %v1147_v17  ;;  %v819_v17 = vld [vmem:[%s1441_s11 + $0x10] sm:$0xff] }
  0x70   : > { %v693_v41 = vpop.permute.xlu2 %692 }
  0x71   : > { %v832_v42 = vmul.f32 %v830_v34, %v693_v41  ;;  %v921_v43 = vmul.f32 %v919_v35, %v693_v41  ;;  %v697_v0 = vmul.f32 %v695_v54, %v693_v41 }
  0x78   : > { %v1343_v56 = vpop.permute.xlu2 %688 }
  0x79   : > { %v696_v57 = vmul.f32 %v695_v54, %v1343_v56 }
  0x84   : > { %v1334_v48 = vpop.permute.xlu1 %663 }
  0x85   : > { %v672_v53 = vmul.f32 %v671_v50, %v1334_v48 }
  0x86   : > { %v669_v27 = vpop.permute.xlu0 %668 }
  0x87   : > { %v824_v37 = vmul.f32 %v822_v30, %v669_v27  ;;  %v913_v38 = vmul.f32 %v911_v31, %v669_v27  ;;  %v673_v59 = vmul.f32 %v671_v50, %v669_v27 }
  0x8d   : > { %v1339_v52 = vpop.permute.xlu1 %675 }
  0x8e   : > { %v683_v55 = vmul.f32 %v682_v51, %v1339_v52  ;;  %v826_v27 = vmul.f32 %v825_v32, %v1339_v52 }
  0x8f   : > { %v680_v36 = vpop.permute.xlu0 %679 }
  0x90   : > { %v648_v19 = vpop.f32.mrf.mxu0  ;;  %v827_v39 = vmul.f32 %v825_v32, %v680_v36  ;;  %v916_v40 = vmul.f32 %v914_v33, %v680_v36  ;;  %v685_v58 = vadd.f32 %v683_v55, %v672_v53  ;;  %v684_v61 = vmul.f32 %v682_v51, %v680_v36 }
  0x91   : > { %v649_v20 = vadd.f32 %v1129_v18, %v648_v19  ;;  %v817_v19 = vld [vmem:[%s1441_s11] sm:$0xff]  ;;  %v831_v36 = vmul.f32 %v830_v34, %v1343_v56 }
  0x92   : > { %v829_v44 = vadd.f32 %v827_v39, %v824_v37  ;;  %v918_v45 = vadd.f32 %v916_v40, %v913_v38  ;;  %v698_v60 = vadd.f32 %v696_v57, %v685_v58  ;;  %v686_v2 = vadd.f32 %v684_v61, %v673_v59  ;;  %v1131_v39 = vld [vmem:[%s1443_s13] ss:$0 sm:$0xff] }
  0x93   : > { %v654_v21 = vmax.f32 %v649_v20, 0.0  ;;  %v912_v58 = vmul.f32 %v911_v31, %v1334_v48  ;;  %v915_v59 = vmul.f32 %v914_v33, %v1339_v52  ;;  %v613_v33 = vld [vmem:[%s598_s19] sm:$0xff] }
  0x94   : > { %v1330_v46 = vadd.f32 %v832_v42, %v829_v44  ;;  %v1332_v47 = vadd.f32 %v921_v43, %v918_v45  ;;  %v699_v4 = vadd.f32 %v697_v0, %v686_v2  ;;  %v908_v45 = vld [vmem:[%s1444_s14 + $0x10] sm:$0xff] }
  0x95   : > { %1085 = vmatmul.msk.f32.vlgmr.msra.gmra.mxu1 %vm700_vm1, %v654_v21  ;;  %v917_v61 = vadd.f32 %v915_v59, %v912_v58 }
  0x96   : > { %943 = vmatpush.msrb.mxu1 %v908_v45 }
  0x98   : > { %v651_v22 = vpop.f32.mrf.mxu0 }
  0x99   : > { %v652_v23 = vadd.f32 %v1129_v18, %v651_v22  ;;  %v818_v18 = vld [vmem:[%s1441_s11 + $0x8] sm:$0xff] }
  0x9b   : > { %v655_v24 = vmax.f32 %v652_v23, 0.0 }
  0x9d   : > { %1086 = vmatmul.msk.f32.vlgmr.msra.gmra.mxu2 %vm700_vm1, %v655_v24 }
  0xa5   : > { %1087 = vmatmul.msk.f32.vlgmr.msrb.gmra.mxu2 %vm700_vm1, %v736_v25 }
  0xad   : > { %1088 = vmatmul.msk.f32.gmra.mxu2 %vm700_vm1, %v737_v26  ;;  %v823_v26 = vmul.f32 %v822_v30, %v1334_v48 }
  0xaf   : > { %v828_v37 = vadd.f32 %v826_v27, %v823_v26 }
  0xb1   : > { %v833_v38 = vadd.f32 %v831_v36, %v828_v37 }
 0x112   : > { %v724_v62 = vpop.f32.mrf.mxu1 }
 0x113   : > { %v725_v1 = vadd.f32 %v724_v62, %v698_v60  ;;  %v920_v60 = vmul.f32 %v919_v35, %v1343_v56 }
 0x115   : > { %v734_v5 = vadd.f32 %v1130_v3, %v725_v1  ;;  %v922_v62 = vadd.f32 %v920_v60, %v917_v61 }
 0x120   : > { %v727_v63 = vpop.f32.mrf.mxu2 }
 0x121   : > { %v728_v8 = vadd.f32 %v727_v63, %v699_v4  ;;  %v1132_v63 = vld [vmem:[%s1446_s16] ss:$0 sm:$0xff] }
 0x123   : > { %v735_v9 = vadd.f32 %v1130_v3, %v728_v8 }
 0x128   : > { %v765_v6 = vpop.f32.mrf.mxu2 }
 0x129   : > { %v771_v7 = vadd.f32 %v765_v6, %v734_v5  ;;  %v614_v5 = vld [vmem:[%s598_s19 + $0x8] sm:$0xf] }
 0x12b   : > { %775 = vrot.lane.b32.xlu2 %v771_v7, %s1148_s29 }
 0x130   : > { %v768_v10 = vpop.f32.mrf.mxu2 }
 0x131   : > { %v772_v11 = vadd.f32 %v768_v10, %v735_v9 }
 0x133   : > { %777 = vrot.lane.b32.xlu1 %v772_v11, %s1148_s29 }
 0x185   : > { %v776_v14 = vpop.permute.xlu2 %775 }
 0x1a5   : > { %v778_v12 = vpop.permute.xlu1 %777 }
 0x1a6   : > { %1089 = vmatpush.msk.msra.mxu3 %vm787_vm2, %v778_v12 }
 0x1a8   : > { %805 = vmatpush.msra.mxu3 %v776_v14 }
 0x1a9   : > { %1090 = vmatmul.msk.f32.vlgmr.msra.gmra.mxu3 %vm780_vm3, %v615_v13 }
 0x1aa   : > { %853 = vmatpush.msrb.mxu3 %v820_v15 }
 0x1ac   : > { %854 = vmatpush.msrb.mxu3 %v819_v17 }
 0x1ae   : > { %855 = vmatpush.msrb.mxu3 %v818_v18 }
 0x1b0   : > { %856 = vmatpush.msrb.mxu3 %v817_v19 }
 0x1b1   : > { %1091 = vmatmul.msk.f32.gmra.mxu3 %vm780_vm3, %v616_v16 }
 0x22c   : > { %v807_v20 = vpop.f32.mrf.mxu3 }
 0x22d   : > { %v813_v21 = vadd.f32 %v807_v20, %v771_v7 }
 0x22f   : > { %v815_v22 = vmax.f32 %v813_v21, 0.0 }
 0x231   : > { %1092 = vmatmul.msk.f32.vlgmr.msrb.gmra.mxu3 %vm700_vm1, %v815_v22 }
 0x234   : > { %v810_v23 = vpop.f32.mrf.mxu3 }
 0x235   : > { %v814_v24 = vadd.f32 %v810_v23, %v772_v11 }
 0x237   : > { %v816_v25 = vmax.f32 %v814_v24, 0.0 }
 0x239   : > { %1093 = vmatmul.msk.f32.gmra.mxu3 %vm700_vm1, %v816_v25 }
 0x2b4   : > { %v858_v40 = vpop.f32.mrf.mxu3 }
 0x2b5   : > { %v859_v41 = vadd.f32 %v858_v40, %v833_v38 }
 0x2b7   : > { %v868_v42 = vadd.f32 %v1131_v39, %v859_v41 }
 0x2b9   : > { %872 = vrot.lane.b32.xlu1 %v868_v42, %s1148_s29 }
 0x2bc   : > { %v861_v30 = vpop.f32.mrf.mxu3 }
 0x2bd   : > { %v862_v43 = vadd.f32 %v861_v30, %v1330_v46  ;;  %v907_v46 = vld [vmem:[%s1444_s14 + $0x8] sm:$0xff] }
 0x2be   : > { %944 = vmatpush.msrb.mxu1 %v907_v46 }
 0x2bf   : > { %v869_v44 = vadd.f32 %v1131_v39, %v862_v43 }
 0x2c0   : > { %945 = vmatpush.msrb.mxu1 %v906_v49 }
 0x2c1   : > { %874 = vrot.lane.b32.xlu0 %v869_v44, %s1148_s29 }
 0x32b   : > { %v873_v34 = vpop.permute.xlu1 %872 }
 0x333   : > { %v875_v32 = vpop.permute.xlu0 %874 }
 0x334   : > { %1094 = vmatpush.msk.msrb.mxu0 %vm787_vm2, %v875_v32 }
 0x336   : > { %894 = vmatpush.msrb.mxu0 %v873_v34 }
 0x337   : > { %1095 = vmatmul.msk.f32.vlgmr.msrb.gmra.mxu0 %vm780_vm3, %v615_v13 }
 0x33f   : > { %1096 = vmatmul.msk.f32.gmra.mxu0 %vm780_vm3, %v616_v16 }
 0x3b4   : > { %v896_v50 = vpop.f32.mrf.mxu0 }
 0x3b5   : > { %v902_v51 = vadd.f32 %v896_v50, %v868_v42 }
 0x3b7   : > { %v904_v53 = vmax.f32 %v902_v51, 0.0 }
 0x3b9   : > { %963 = vrot.lane.b32.xlu2 %v904_v53, %s1149_s28  ;;  %1097 = vmatmul.msk.f32.vlgmr.msrb.gmra.mxu1 %vm700_vm1, %v904_v53 }
 0x3bc   : > { %v899_v54 = vpop.f32.mrf.mxu0 }
 0x3bd   : > { %v903_v55 = vadd.f32 %v899_v54, %v869_v44 }
 0x3bf   : > { %v905_v57 = vmax.f32 %v903_v55, 0.0 }
 0x3c1   : > { %965 = vrot.lane.b32.xlu0 %v905_v57, %s1149_s28  ;;  %1098 = vmatmul.msk.f32.gmra.mxu1 %vm700_vm1, %v905_v57 }
 0x413   : > { %v964_v56 = vpop.permute.xlu2 %963 }
 0x433   : > { %v966_v8 = vpop.permute.xlu0 %965 }
 0x436   : > { %v947_v0 = vpop.f32.mrf.mxu1 }
 0x437   : > { %v948_v1 = vadd.f32 %v947_v0, %v922_v62 }
 0x439   : > { %v957_v2 = vadd.f32 %v1132_v63, %v948_v1 }
 0x43b   : > { %1133 = vtanh.f32 %v957_v2 }
 0x43e   : > { %v950_v31 = vpop.f32.mrf.mxu1 }
 0x43f   : > { %v951_v29 = vadd.f32 %v950_v31, %v1332_v47 }
 0x441   : > { %v1134_v35 = vpop.eup %1133  ;;  %v958_v48 = vadd.f32 %v1132_v63, %v951_v29 }
 0x442   : > { %v961_v52 = vadd.f32 %v1134_v35, %v613_v33 }
 0x443   : > { %1135 = vtanh.f32 %v958_v48 }
 0x444   : > { %v970_v3 = vsel %vm969_vm4, %v961_v52, %v964_v56 }
 0x445   : > { %v973_v4 = vsel %vm972_vm5, %v970_v3, 0.0 }
 0x446   : > { %975 = vst [vmem:[%s608_s22] sm:$0xff] %v973_v4 }
 0x449   : > { %v1136_v6 = vpop.eup %1135 }
 0x44a   : > { %v962_v7 = vadd.f32 %v1136_v6, %v614_v5 }
 0x44c   : > { %v971_v9 = vsel %vm969_vm4, %v962_v7, %v966_v8 }
 0x44d   : > { %v974_v47 = vsel %vm972_vm5, %v971_v9, 0.0 }
 0x44e   : > { %976 = vst [vmem:[%s608_s22 + $0x8] sm:$0xf] %v974_v47 }
 0x44f PF: > { %s27_s24 = sadd.s32 1, %s1143_s24  }
 0x450   : > { %p24_p4 = scmp.ge.s32.totalorder %s27_s24, 4  }
 0x452   :  { %26 = sbr.rel (!%p24_p4) target bundleno = 3 (0x3), region = 127 }

</bundles_post_ra>
